<compile_context>
chip_gen: v5e
topology: v5e:2x2
jax: 0.10.0
libtpu: 0.0.40
codegen_flags: <defaults>
</compile_context>

<pallas_src>
import jax
import jax.numpy as jnp
from jax.experimental import pallas as pl
from jax.experimental.pallas import tpu as pltpu


def mlp_kernel(x_ref, w1_ref, b1_ref, w2_ref, b2_ref, w3_ref, b3_ref, o_ref):
    # Cast the activation tile to the MXU compute dtype in-kernel (no separate
    # XLA cast pass over x in HBM). Biases stay f32 and are added to the f32
    # accumulator; ReLU runs in f32 on the VPU before downcast for the next matmul.
    x = x_ref[...].astype(w1_ref.dtype)
    h = jnp.dot(x, w1_ref[...], preferred_element_type=jnp.float32)
    h = jnp.maximum(h + b1_ref[...], 0.0)
    h = jnp.dot(h.astype(w2_ref.dtype), w2_ref[...], preferred_element_type=jnp.float32)
    h = jnp.maximum(h + b2_ref[...], 0.0)
    out = jnp.dot(h.astype(w3_ref.dtype), w3_ref[...], preferred_element_type=jnp.float32)
    o_ref[...] = (out + b3_ref[...]).astype(o_ref.dtype)


def _round_up(x, m):
    return (x + m - 1) // m * m


# Lazily resolved: does this JAX build accept pipeline_mode=pl.Buffered(1) on the
# main pallas_call pipeline? (perf-only; falls back to default double buffering)
_SINGLE_BUFFER_WEIGHTS_OK = None


def mlp_forward(x, params, *, tile_b_target=512, out_dtype=None):
    """Fused 3-layer MLP forward.

    x: (batch, in_features). params: [(W1,b1),(W2,b2),(W3,b3)] with W stored
    (in, out) — run them through prepare_mlp_params() ONCE so weights are already
    in the MXU compute dtype (bf16) and biases in f32. Returns (batch, out_features)
    in `out_dtype` (default: x.dtype).
    """
    global _SINGLE_BUFFER_WEIGHTS_OK
    (w1, b1), (w2, b2), (w3, b3) = params
    batch, in_features = x.shape
    d1, d2, d_out = w1.shape[1], w2.shape[1], w3.shape[1]
    out_dtype = x.dtype if out_dtype is None else jnp.dtype(out_dtype)

    # Batch tiling: big tiles (amortize per-step overhead + weight re-push), but
    # keep >=2 grid steps when possible so v7x's 2 TensorCores both get work, and
    # make tile_b divide padded_batch so padding waste stays small.
    padded8 = _round_up(batch, 8)
    n_tiles = pl.cdiv(padded8, tile_b_target)
    if padded8 >= 16:
        n_tiles = max(n_tiles, 2)
    tile_b = _round_up(pl.cdiv(padded8, n_tiles), 8)
    padded_batch = tile_b * n_tiles
    if padded_batch != batch:
        x = jnp.pad(x, ((0, padded_batch - batch), (0, 0)))
    grid = (n_tiles,)

    # Explicit VMEM budget (default scoped limit is 16 MiB v5e / 32 MiB v6e+,
    # far below physical) + advisory cost estimate.
    weight_bytes = sum(int(a.size) * a.dtype.itemsize for a in (w1, b1, w2, b2, w3, b3))
    x_tile_bytes = tile_b * in_features * x.dtype.itemsize
    o_tile_bytes = tile_b * d_out * out_dtype.itemsize
    interm_bytes = 4 * tile_b * (in_features + d1 + d2 + d_out)  # f32 working set
    vmem_limit = int(1.25 * (2 * weight_bytes + 2 * (x_tile_bytes + o_tile_bytes) + interm_bytes))
    vmem_limit = min(max(vmem_limit, 32 * 2**20), 64 * 2**20)

    flops = 2 * padded_batch * (in_features * d1 + d1 * d2 + d2 * d_out)
    bytes_accessed = (
        padded_batch * in_features * x.dtype.itemsize
        + weight_bytes
        + padded_batch * d_out * out_dtype.itemsize
    )

    const2d = lambda i: (0, 0)  # same block every step -> weights stay VMEM-resident

    def build_call(single_buffer_weights):
        if single_buffer_weights:
            # Constant-index blocks never change -> no need for double buffering;
            # halves resident weight footprint (matters on v7x's 64 MiB VMEM).
            wspec = lambda a: pl.BlockSpec(a.shape, const2d, pipeline_mode=pl.Buffered(1))
        else:
            wspec = lambda a: pl.BlockSpec(a.shape, const2d)
        return pl.pallas_call(
            mlp_kernel,
            out_shape=jax.ShapeDtypeStruct((padded_batch, d_out), out_dtype),
            grid=grid,
            in_specs=[
                pl.BlockSpec((tile_b, in_features), lambda i: (i, 0)),  # streamed x tiles
                wspec(w1), wspec(b1), wspec(w2), wspec(b2), wspec(w3), wspec(b3),
            ],
            out_specs=pl.BlockSpec((tile_b, d_out), lambda i: (i, 0)),
            compiler_params=pltpu.CompilerParams(
                dimension_semantics=("parallel",),  # shard batch tiles across TCs (v7x)
                vmem_limit_bytes=vmem_limit,
            ),
            cost_estimate=pl.CostEstimate(
                flops=flops, transcendentals=0, bytes_accessed=bytes_accessed
            ),
        )

    args = (x, w1, b1, w2, b2, w3, b3)
    if _SINGLE_BUFFER_WEIGHTS_OK is None:
        try:
            out = jax.block_until_ready(build_call(True)(*args))
            _SINGLE_BUFFER_WEIGHTS_OK = True
        except Exception:
            # pipeline_mode=pl.Buffered(1) not supported by this build; use defaults.
            _SINGLE_BUFFER_WEIGHTS_OK = False
            out = build_call(False)(*args)
    else:
        out = build_call(_SINGLE_BUFFER_WEIGHTS_OK)(*args)
    return out[:batch]


def xavier_uniform(key, in_features, out_features, dtype=jnp.float32):
    # Matches torch.nn.init.xavier_uniform_(gain=1): U(-a, a), a = sqrt(6/(fan_in+fan_out))
    bound = (6.0 / (in_features + out_features)) ** 0.5
    # stored as (in, out) so the kernel computes x @ W (== torch x @ W^T with W (out,in))
    return jax.random.uniform(key, (in_features, out_features), dtype,
                              minval=-bound, maxval=bound)


def init_mlp_params(key, input_size, hidden_sizes, output_size, dtype=jnp.float32):
    sizes = [input_size] + list(hidden_sizes) + [output_size]
    params = []
    for i in range(len(sizes) - 1):
        key, sub = jax.random.split(key)
        w = xavier_uniform(sub, sizes[i], sizes[i + 1], dtype)
        b = jnp.zeros((1, sizes[i + 1]), dtype)  # weights_init_: constant 0 bias
        params.append((w, b))
    return params


def prepare_mlp_params(params, compute_dtype=jnp.bfloat16):
    """One-time conversion to kernel-ready dtypes: W -> compute_dtype (MXU operands),
    b -> f32 (added to the f32 accumulator). Call once at init, NOT per forward."""
    return [(w.astype(compute_dtype), b.astype(jnp.float32)) for w, b in params]


def mlp_reference(x, params, compute_dtype=jnp.float32):
    # Pure-JAX reference. With compute_dtype=bf16 it mirrors the kernel's
    # bf16-operand / f32-accumulate arithmetic.
    h = x
    for idx, (w, b) in enumerate(params):
        y = jnp.dot(h.astype(compute_dtype), w.astype(compute_dtype),
                    preferred_element_type=jnp.float32) + b.astype(jnp.float32)
        h = y if idx == len(params) - 1 else jnp.maximum(y, 0.0)
    return h.astype(x.dtype)


if __name__ == "__main__":
    key = jax.random.PRNGKey(0)
    batch = 256
    input_size = 128
    hidden_sizes = (256, 256)
    output_size = 128

    key, xkey = jax.random.split(key)
    x = jax.random.normal(xkey, (batch, input_size), jnp.float32)
    params_f32 = init_mlp_params(key, input_size, hidden_sizes, output_size)
    params = prepare_mlp_params(params_f32)  # convert weights/biases ONCE (not per call)

    out = jax.block_until_ready(mlp_forward(x, params))
    assert out.shape == (batch, output_size) and out.dtype == x.dtype

    # Tight check vs a reference using the same bf16-operand / f32-accumulate math.
    ref_mixed = mlp_reference(x, params_f32, compute_dtype=jnp.bfloat16)
    assert jnp.allclose(out, ref_mixed, atol=2e-3, rtol=2e-3), "mismatch vs bf16 reference"

    # Loose check vs the full-f32 reference (bf16 operand rounding only).
    ref_f32 = mlp_reference(x, params_f32, compute_dtype=jnp.float32)
    assert jnp.allclose(out, ref_f32, atol=5e-2, rtol=5e-2), "mismatch vs f32 reference"

    # Tiny / non-multiple batch exercises the batch-padding path.
    out_small = jax.block_until_ready(mlp_forward(x[:3], params))
    assert out_small.shape == (3, output_size)
    assert jnp.allclose(out_small, ref_mixed[:3], atol=2e-3, rtol=2e-3), "small-batch mismatch"

    # bf16 output path (cuts store bytes in the HBM-bound regime on v6e/v7x).
    out_bf16 = jax.block_until_ready(mlp_forward(x, params, out_dtype=jnp.bfloat16))
    assert out_bf16.dtype == jnp.bfloat16
    assert jnp.allclose(out_bf16.astype(jnp.float32), ref_mixed, atol=5e-2, rtol=5e-2), \
        "mismatch on bf16-output path"

    print("KERNEL_OK")
</pallas_src>

<mosaic_0001>
module attributes {stable_mosaic.version = 11 : i64} {
  func.func @mlp_kernel(%arg0: i32, %arg1: memref<128x128xf32, #tpu.memory_space<vmem>>, %arg2: memref<128x256xbf16, #tpu.memory_space<vmem>>, %arg3: memref<1x256xf32, #tpu.memory_space<vmem>>, %arg4: memref<256x256xbf16, #tpu.memory_space<vmem>>, %arg5: memref<1x256xf32, #tpu.memory_space<vmem>>, %arg6: memref<256x128xbf16, #tpu.memory_space<vmem>>, %arg7: memref<1x128xf32, #tpu.memory_space<vmem>>, %arg8: memref<128x128xf32, #tpu.memory_space<vmem>>) attributes {dimension_semantics = [#tpu.dimension_semantics<parallel>], iteration_bounds = array<i64: 2>, scalar_prefetch = 0 : i64, scratch_operands = 0 : i64, tpu.core_type = #tpu.core_type<tc>, window_params = [{transform_indices = @transform_0, window_bounds = array<i64: 128, 128>}, {pipeline_mode = #tpu.pipeline_mode<synchronous>, transform_indices = @transform_1, window_bounds = array<i64: 128, 256>}, {pipeline_mode = #tpu.pipeline_mode<synchronous>, transform_indices = @transform_2, window_bounds = array<i64: 1, 256>}, {pipeline_mode = #tpu.pipeline_mode<synchronous>, transform_indices = @transform_3, window_bounds = array<i64: 256, 256>}, {pipeline_mode = #tpu.pipeline_mode<synchronous>, transform_indices = @transform_4, window_bounds = array<i64: 1, 256>}, {pipeline_mode = #tpu.pipeline_mode<synchronous>, transform_indices = @transform_5, window_bounds = array<i64: 256, 128>}, {pipeline_mode = #tpu.pipeline_mode<synchronous>, transform_indices = @transform_6, window_bounds = array<i64: 1, 128>}, {transform_indices = @transform_7, window_bounds = array<i64: 128, 128>}]} {
    %c0 = arith.constant 0 : index
    %c0_0 = arith.constant 0 : index
    %0 = vector.load %arg1[%c0, %c0_0] : memref<128x128xf32, #tpu.memory_space<vmem>>, vector<128x128xf32>
    %1 = arith.truncf %0 : vector<128x128xf32> to vector<128x128xbf16>
    %c0_1 = arith.constant 0 : index
    %c0_2 = arith.constant 0 : index
    %2 = vector.load %arg2[%c0_1, %c0_2] : memref<128x256xbf16, #tpu.memory_space<vmem>>, vector<128x256xbf16>
    %cst = arith.constant dense<0.000000e+00> : vector<128x256xf32>
    %3 = tpu.matmul %1, %2, %cst {dimension_numbers = #tpu.dot_dimension_numbers<[1], [0], [0], [1], [0, 0, 1, 1], [], []>} : vector<128x128xbf16>, vector<128x256xbf16>, vector<128x256xf32> -> vector<128x256xf32>
    %c0_3 = arith.constant 0 : index
    %c0_4 = arith.constant 0 : index
    %4 = vector.load %arg3[%c0_3, %c0_4] : memref<1x256xf32, #tpu.memory_space<vmem>>, vector<1x256xf32>
    %5 = vector.broadcast %4 : vector<1x256xf32> to vector<128x256xf32>
    %6 = arith.addf %3, %5 : vector<128x256xf32>
    %cst_5 = arith.constant 0.000000e+00 : f32
    %7 = vector.broadcast %cst_5 : f32 to vector<128x256xf32>
    %8 = arith.maximumf %6, %7 : vector<128x256xf32>
    %9 = arith.truncf %8 : vector<128x256xf32> to vector<128x256xbf16>
    %c0_6 = arith.constant 0 : index
    %c0_7 = arith.constant 0 : index
    %10 = vector.load %arg4[%c0_6, %c0_7] : memref<256x256xbf16, #tpu.memory_space<vmem>>, vector<256x256xbf16>
    %cst_8 = arith.constant dense<0.000000e+00> : vector<128x256xf32>
    %11 = tpu.matmul %9, %10, %cst_8 {dimension_numbers = #tpu.dot_dimension_numbers<[1], [0], [0], [1], [0, 0, 1, 1], [], []>} : vector<128x256xbf16>, vector<256x256xbf16>, vector<128x256xf32> -> vector<128x256xf32>
    %c0_9 = arith.constant 0 : index
    %c0_10 = arith.constant 0 : index
    %12 = vector.load %arg5[%c0_9, %c0_10] : memref<1x256xf32, #tpu.memory_space<vmem>>, vector<1x256xf32>
    %13 = vector.broadcast %12 : vector<1x256xf32> to vector<128x256xf32>
    %14 = arith.addf %11, %13 : vector<128x256xf32>
    %cst_11 = arith.constant 0.000000e+00 : f32
    %15 = vector.broadcast %cst_11 : f32 to vector<128x256xf32>
    %16 = arith.maximumf %14, %15 : vector<128x256xf32>
    %17 = arith.truncf %16 : vector<128x256xf32> to vector<128x256xbf16>
    %c0_12 = arith.constant 0 : index
    %c0_13 = arith.constant 0 : index
    %18 = vector.load %arg6[%c0_12, %c0_13] : memref<256x128xbf16, #tpu.memory_space<vmem>>, vector<256x128xbf16>
    %cst_14 = arith.constant dense<0.000000e+00> : vector<128x128xf32>
    %19 = tpu.matmul %17, %18, %cst_14 {dimension_numbers = #tpu.dot_dimension_numbers<[1], [0], [0], [1], [0, 0, 1, 1], [], []>} : vector<128x256xbf16>, vector<256x128xbf16>, vector<128x128xf32> -> vector<128x128xf32>
    %c0_15 = arith.constant 0 : index
    %c0_16 = arith.constant 0 : index
    %20 = vector.load %arg7[%c0_15, %c0_16] : memref<1x128xf32, #tpu.memory_space<vmem>>, vector<1x128xf32>
    %21 = vector.broadcast %20 : vector<1x128xf32> to vector<128x128xf32>
    %22 = arith.addf %19, %21 : vector<128x128xf32>
    %c0_17 = arith.constant 0 : index
    %c0_18 = arith.constant 0 : index
    %23 = vector.load %arg8[%c0_17, %c0_18] : memref<128x128xf32, #tpu.memory_space<vmem>>, vector<128x128xf32>
    tpu.vector_store %arg8[%c0_17, %c0_18], %22 {strides = array<i32>} : memref<128x128xf32, #tpu.memory_space<vmem>>, vector<128x128xf32>,
    return
  }
  func.func @transform_0(%arg0: i32) -> (i32, i32) {
    %c0_i32 = arith.constant 0 : i32
    %c0_i32_0 = arith.constant 0 : i32
    return %arg0, %c0_i32 : i32, i32
  }
  func.func @transform_1(%arg0: i32) -> (i32, i32) {
    %c0_i32 = arith.constant 0 : i32
    %c0_i32_0 = arith.constant 0 : i32
    %c0_i32_1 = arith.constant 0 : i32
    return %c0_i32, %c0_i32_0 : i32, i32
  }
  func.func @transform_2(%arg0: i32) -> (i32, i32) {
    %c0_i32 = arith.constant 0 : i32
    %c0_i32_0 = arith.constant 0 : i32
    %c0_i32_1 = arith.constant 0 : i32
    return %c0_i32, %c0_i32_0 : i32, i32
  }
  func.func @transform_3(%arg0: i32) -> (i32, i32) {
    %c0_i32 = arith.constant 0 : i32
    %c0_i32_0 = arith.constant 0 : i32
    %c0_i32_1 = arith.constant 0 : i32
    return %c0_i32, %c0_i32_0 : i32, i32
  }
  func.func @transform_4(%arg0: i32) -> (i32, i32) {
    %c0_i32 = arith.constant 0 : i32
    %c0_i32_0 = arith.constant 0 : i32
    %c0_i32_1 = arith.constant 0 : i32
    return %c0_i32, %c0_i32_0 : i32, i32
  }
  func.func @transform_5(%arg0: i32) -> (i32, i32) {
    %c0_i32 = arith.constant 0 : i32
    %c0_i32_0 = arith.constant 0 : i32
    %c0_i32_1 = arith.constant 0 : i32
    return %c0_i32, %c0_i32_0 : i32, i32
  }
  func.func @transform_6(%arg0: i32) -> (i32, i32) {
    %c0_i32 = arith.constant 0 : i32
    %c0_i32_0 = arith.constant 0 : i32
    %c0_i32_1 = arith.constant 0 : i32
    return %c0_i32, %c0_i32_0 : i32, i32
  }
  func.func @transform_7(%arg0: i32) -> (i32, i32) {
    %c0_i32 = arith.constant 0 : i32
    %c0_i32_0 = arith.constant 0 : i32
    return %arg0, %c0_i32 : i32, i32
  }
}

module attributes {stable_mosaic.version = 11 : i64} {
  func.func @mlp_kernel(%arg0: i32, %arg1: memref<128x128xf32, #tpu.memory_space<vmem>>, %arg2: memref<128x256xbf16, #tpu.memory_space<vmem>>, %arg3: memref<1x256xf32, #tpu.memory_space<vmem>>, %arg4: memref<256x256xbf16, #tpu.memory_space<vmem>>, %arg5: memref<1x256xf32, #tpu.memory_space<vmem>>, %arg6: memref<256x128xbf16, #tpu.memory_space<vmem>>, %arg7: memref<1x128xf32, #tpu.memory_space<vmem>>, %arg8: memref<128x128xf32, #tpu.memory_space<vmem>>) attributes {dimension_semantics = [#tpu.dimension_semantics<parallel>], iteration_bounds = array<i64: 2>, scalar_prefetch = 0 : i64, scratch_operands = 0 : i64, tpu.core_type = #tpu.core_type<tc>, window_params = [{transform_indices = @transform_0, window_bounds = array<i64: 128, 128>}, {pipeline_mode = #tpu.pipeline_mode<synchronous>, transform_indices = @transform_1, window_bounds = array<i64: 128, 256>}, {pipeline_mode = #tpu.pipeline_mode<synchronous>, transform_indices = @transform_2, window_bounds = array<i64: 1, 256>}, {pipeline_mode = #tpu.pipeline_mode<synchronous>, transform_indices = @transform_3, window_bounds = array<i64: 256, 256>}, {pipeline_mode = #tpu.pipeline_mode<synchronous>, transform_indices = @transform_4, window_bounds = array<i64: 1, 256>}, {pipeline_mode = #tpu.pipeline_mode<synchronous>, transform_indices = @transform_5, window_bounds = array<i64: 256, 128>}, {pipeline_mode = #tpu.pipeline_mode<synchronous>, transform_indices = @transform_6, window_bounds = array<i64: 1, 128>}, {transform_indices = @transform_7, window_bounds = array<i64: 128, 128>}]} {
    %c0 = arith.constant 0 : index
    %c0_0 = arith.constant 0 : index
    %0 = vector.load %arg1[%c0, %c0_0] : memref<128x128xf32, #tpu.memory_space<vmem>>, vector<128x128xf32>
    %1 = arith.truncf %0 : vector<128x128xf32> to vector<128x128xbf16>
    %c0_1 = arith.constant 0 : index
    %c0_2 = arith.constant 0 : index
    %2 = vector.load %arg2[%c0_1, %c0_2] : memref<128x256xbf16, #tpu.memory_space<vmem>>, vector<128x256xbf16>
    %cst = arith.constant dense<0.000000e+00> : vector<128x256xf32>
    %3 = tpu.matmul %1, %2, %cst {dimension_numbers = #tpu.dot_dimension_numbers<[1], [0], [0], [1], [0, 0, 1, 1], [], []>} : vector<128x128xbf16>, vector<128x256xbf16>, vector<128x256xf32> -> vector<128x256xf32>
    %c0_3 = arith.constant 0 : index
    %c0_4 = arith.constant 0 : index
    %4 = vector.load %arg3[%c0_3, %c0_4] : memref<1x256xf32, #tpu.memory_space<vmem>>, vector<1x256xf32>
    %5 = vector.broadcast %4 : vector<1x256xf32> to vector<128x256xf32>
    %6 = arith.addf %3, %5 : vector<128x256xf32>
    %cst_5 = arith.constant 0.000000e+00 : f32
    %7 = vector.broadcast %cst_5 : f32 to vector<128x256xf32>
    %8 = arith.maximumf %6, %7 : vector<128x256xf32>
    %9 = arith.truncf %8 : vector<128x256xf32> to vector<128x256xbf16>
    %c0_6 = arith.constant 0 : index
    %c0_7 = arith.constant 0 : index
    %10 = vector.load %arg4[%c0_6, %c0_7] : memref<256x256xbf16, #tpu.memory_space<vmem>>, vector<256x256xbf16>
    %cst_8 = arith.constant dense<0.000000e+00> : vector<128x256xf32>
    %11 = tpu.matmul %9, %10, %cst_8 {dimension_numbers = #tpu.dot_dimension_numbers<[1], [0], [0], [1], [0, 0, 1, 1], [], []>} : vector<128x256xbf16>, vector<256x256xbf16>, vector<128x256xf32> -> vector<128x256xf32>
    %c0_9 = arith.constant 0 : index
    %c0_10 = arith.constant 0 : index
    %12 = vector.load %arg5[%c0_9, %c0_10] : memref<1x256xf32, #tpu.memory_space<vmem>>, vector<1x256xf32>
    %13 = vector.broadcast %12 : vector<1x256xf32> to vector<128x256xf32>
    %14 = arith.addf %11, %13 : vector<128x256xf32>
    %cst_11 = arith.constant 0.000000e+00 : f32
    %15 = vector.broadcast %cst_11 : f32 to vector<128x256xf32>
    %16 = arith.maximumf %14, %15 : vector<128x256xf32>
    %17 = arith.truncf %16 : vector<128x256xf32> to vector<128x256xbf16>
    %c0_12 = arith.constant 0 : index
    %c0_13 = arith.constant 0 : index
    %18 = vector.load %arg6[%c0_12, %c0_13] : memref<256x128xbf16, #tpu.memory_space<vmem>>, vector<256x128xbf16>
    %cst_14 = arith.constant dense<0.000000e+00> : vector<128x128xf32>
    %19 = tpu.matmul %17, %18, %cst_14 {dimension_numbers = #tpu.dot_dimension_numbers<[1], [0], [0], [1], [0, 0, 1, 1], [], []>} : vector<128x256xbf16>, vector<256x128xbf16>, vector<128x128xf32> -> vector<128x128xf32>
    %c0_15 = arith.constant 0 : index
    %c0_16 = arith.constant 0 : index
    %20 = vector.load %arg7[%c0_15, %c0_16] : memref<1x128xf32, #tpu.memory_space<vmem>>, vector<1x128xf32>
    %21 = vector.broadcast %20 : vector<1x128xf32> to vector<128x128xf32>
    %22 = arith.addf %19, %21 : vector<128x128xf32>
    %c0_17 = arith.constant 0 : index
    %c0_18 = arith.constant 0 : index
    %23 = vector.load %arg8[%c0_17, %c0_18] : memref<128x128xf32, #tpu.memory_space<vmem>>, vector<128x128xf32>
    tpu.vector_store %arg8[%c0_17, %c0_18], %22 {strides = array<i32>} : memref<128x128xf32, #tpu.memory_space<vmem>>, vector<128x128xf32>,
    return
  }
  func.func @transform_0(%arg0: i32) -> (i32, i32) {
    %c0_i32 = arith.constant 0 : i32
    %c0_i32_0 = arith.constant 0 : i32
    return %arg0, %c0_i32 : i32, i32
  }
  func.func @transform_1(%arg0: i32) -> (i32, i32) {
    %c0_i32 = arith.constant 0 : i32
    %c0_i32_0 = arith.constant 0 : i32
    %c0_i32_1 = arith.constant 0 : i32
    return %c0_i32, %c0_i32_0 : i32, i32
  }
  func.func @transform_2(%arg0: i32) -> (i32, i32) {
    %c0_i32 = arith.constant 0 : i32
    %c0_i32_0 = arith.constant 0 : i32
    %c0_i32_1 = arith.constant 0 : i32
    return %c0_i32, %c0_i32_0 : i32, i32
  }
  func.func @transform_3(%arg0: i32) -> (i32, i32) {
    %c0_i32 = arith.constant 0 : i32
    %c0_i32_0 = arith.constant 0 : i32
    %c0_i32_1 = arith.constant 0 : i32
    return %c0_i32, %c0_i32_0 : i32, i32
  }
  func.func @transform_4(%arg0: i32) -> (i32, i32) {
    %c0_i32 = arith.constant 0 : i32
    %c0_i32_0 = arith.constant 0 : i32
    %c0_i32_1 = arith.constant 0 : i32
    return %c0_i32, %c0_i32_0 : i32, i32
  }
  func.func @transform_5(%arg0: i32) -> (i32, i32) {
    %c0_i32 = arith.constant 0 : i32
    %c0_i32_0 = arith.constant 0 : i32
    %c0_i32_1 = arith.constant 0 : i32
    return %c0_i32, %c0_i32_0 : i32, i32
  }
  func.func @transform_6(%arg0: i32) -> (i32, i32) {
    %c0_i32 = arith.constant 0 : i32
    %c0_i32_0 = arith.constant 0 : i32
    %c0_i32_1 = arith.constant 0 : i32
    return %c0_i32, %c0_i32_0 : i32, i32
  }
  func.func @transform_7(%arg0: i32) -> (i32, i32) {
    %c0_i32 = arith.constant 0 : i32
    %c0_i32_0 = arith.constant 0 : i32
    return %arg0, %c0_i32 : i32, i32
  }
}

</mosaic_0001>

<bundles_post_ra>
// kernel: tpu_custom_call.1
= control target key start
LH: loop header
LB: loop body
LE: loop exit
PB: predicated region body
PF: predicated region fallthrough
CT: control target
= control target key end

     0   :  { %s2475_s0 = inlined_call_operand.hbm [shape: f32[256,128], index: 0, kind: input, shape index: {}]   ;;  %s2476_s1 = inlined_call_operand.hbm [shape: bf16[128,256], index: 1, kind: input, shape index: {}]   ;;  %s2477_s2 = inlined_call_operand.hbm [shape: f32[1,256], index: 2, kind: input, shape index: {}]   ;;  %s2478_s3 = inlined_call_operand.hbm [shape: bf16[256,256], index: 3, kind: input, shape index: {}]   ;;  %s2479_s4 = inlined_call_operand.vmem [shape: f32[1,256], index: 4, kind: input, shape index: {}]   ;;  %s2480_s5 = inlined_call_operand.hbm [shape: bf16[256,128], index: 5, kind: input, shape index: {}]   ;;  %s2481_s6 = inlined_call_operand.vmem [shape: f32[1,128], index: 6, kind: input, shape index: {}]   ;;  %s2482_s7 = inlined_call_operand.hbm [shape: f32[256,128], index: 7, kind: output, shape index: {}]  }
   0x1   :  { %2485 = sst [smem:[#allocation16_spill]] %s2476_s1 }
   0x2   :  { %12 = vsyncpa [#allocation3], 0 }
   0x3   :  { %14 = vsyncpa [#allocation3 + $0x1], 0 }
   0x4   :  { %15 = vsyncpa [#allocation6], 0 }
   0x5   :  { %16 = vsyncpa [#allocation9], 0 }
   0x6   :  { %17 = vsyncpa [#allocation4], 0 }
   0x7   :  { %19 = vsyncpa [#allocation4 + $0x1], 0  ;;  %s2166_s24 = smov 0   ;;  %s2168_s25 = smov 0  }
   0x8   :  { %s2170_s26 = smov 0   ;;  %s2172_s27 = smov 0  }
   0x9 LB: > { %s2187_s28 = sadd.s32 4294967295, %s2114_s27   ;;  %s1452_s29 = sadd.s32 4294967294, %s2114_s27   ;;  %s2114_s27 = sphi %s2172_s27, %s2499_s27   ;;  %s2110_s26 = sphi %s2170_s26, %s2498_s26   ;;  %s2106_s25 = sphi %s2168_s25, %s2497_s25   ;;  %s2102_s24 = sphi %s2166_s24, %s2496_s24  }
   0xa   : > { %p45_p0 = scmp.ne.s32.totalorder %s2106_s25, %s2102_s24  ;;  %p46_p1 = scmp.eq.s32.totalorder %s2187_s28, 0 }
   0xb   : > { %p195_p2 = scmp.eq.s32.totalorder %s2187_s28, 1  ;;  %p201_p3 = scmp.eq.s32.totalorder %s1452_s29, 1 }
   0xc   : > { %p2196_p4 = por %p46_p1, %p45_p0  ;;  %p1453_p5 = scmp.ge.s32.totalorder %s2114_s27, 1 }
   0xd   : > { %p2201_p6 = por %p201_p3, %p45_p0  ;;  %p208_p7 = scmp.lt.s32.totalorder %s2114_s27, 3 }
   0xe   : > { %s2488_s1 = sld [smem:[#allocation16_spill]]  ;;  %s2116_s13 = smov [#allocation5]  }
   0xf   : > { %p2209_p8 = pnand %p1453_p5, %p208_p7  ;;  %s221_s14 = sshll.u32 %s2116_s13, 4  ;;  %s222_s14 = int_to_ptr.vmem [resolvable:$true] %s221_s14 }
  0x10   : > { %s245_s18 = sshll.u32 %s2478_s3, 4  ;;  %s2483_s19 = smov 128   ;;  %s246_s18 = int_to_ptr.hbm [resolvable:$true] %s245_s18 }
  0x11   : > { %p1816_p9 = pneg %p2209_p8  ;;  %s2484_s20 = smov 8  }
  0x12   : > { %s2119_s21 = smov [#allocation8]   ;;  %s234_s9 = sshll.u32 %s2477_s2, 4  ;;  %s235_s9 = int_to_ptr.hbm [resolvable:$true] %s234_s9 }
  0x13   : > { %p2217_p10 = pnand %p1816_p9, %p46_p1  ;;  %s247_s22 = sshll.u32 %s2119_s21, 4  ;;  %s248_s22 = int_to_ptr.vmem [resolvable:$true] %s247_s22 }
  0x14   : > { %s219_s11 = sshll.u32 %s2488_s1, 4  ;;  %s2121_s17 = smov [#allocation10]   ;;  %s220_s11 = int_to_ptr.hbm [resolvable:$true] %s219_s11 }
  0x15   : > { %1819 = dma.hbm_to_vmem [thread:$0]  (!%p2217_p10), %s220_s11, 2048, %s222_s14, [#allocation6], %s2483_s19, %s2483_s19, %s2484_s20  }
  0x16   : > { %1825 = dma.hbm_to_vmem [thread:$0]  (!%p2217_p10), %s246_s18, 4096, %s248_s22, [#allocation9], %s2483_s19, %s2483_s19, %s2484_s20  }
  0x17   : > { %s262_s11 = sshll.u32 %s2480_s5, 4  ;;  %s2120_s14 = smov [#allocation7]   ;;  %s263_s11 = int_to_ptr.hbm [resolvable:$true] %s262_s11 }
  0x18   : > { %s236_s16 = sshll.u32 %s2120_s14, 4  ;;  %s264_s18 = sshll.u32 %s2121_s17, 4  ;;  %s237_s16 = int_to_ptr.vmem [resolvable:$true] %s236_s16  ;;  %s265_s18 = int_to_ptr.vmem [resolvable:$true] %s264_s18 }
  0x19   : > { %1822 = dma.hbm_to_vmem [thread:$0]  (!%p2217_p10), %s235_s9, 32, %s237_s16, [#allocation6]  }
  0x1a   : > { %s2122_s21 = smov 64   ;;  %s2123_s22 = smov 4  }
  0x1b   : > { %1828 = dma.hbm_to_vmem [thread:$0]  (!%p2217_p10), %s263_s11, 2048, %s265_s18, [#allocation9], %s2122_s21, %s2122_s21, %s2123_s22  }
  0x1c   : > { %s2246_s23 = sadd.s32 1, %s2114_s27   ;;  %s32_s10 = sadd.s32 1, %s2110_s26 }
  0x1d   : > { %s29_s29 = ssub.s32 %s2114_s27, %s2246_s23  ;;  %p39_p13 = scmp.ne.s32.totalorder %s2110_s26, %s2106_s25 }
  0x1e   : > { %p30_p12 = scmp.eq.s32.totalorder %s29_s29, 0  ;;  %p40_p0 = scmp.eq.s32.totalorder %s2114_s27, 0 }
  0x1f   : > { %p2259_p5 = por %p195_p2, %p39_p13  ;;  %p1841_p7 = scmp.lt.s32.totalorder %s2114_s27, 2 }
  0x20   : > { %s2255_s13 = scalar_select %p30_p12, %s2110_s26, %s32_s10  }
  0x21   : > { %p41_p3 = por %p40_p0, %p39_p13  ;;  %s281_s14 = sand.u32 1, %s2110_s26  }
  0x22   : > { %s1459_s15 = sshll.u32 %s281_s14, 7  ;;  %s1730_s11 = sshll.u32 %s2114_s27, 7 }
  0x23   : > { %s290_s18 = scalar_lea.hbm %s2475_s0, %s1730_s11  ;;  %s285_s21 = scalar_lea.vmem [#allocation2], %s1459_s15 }
  0x24   : > { %s293_s22 = sshll.u32 %s285_s21, 4  ;;  %s291_s29 = sshll.u32 %s290_s18, 4  ;;  %s294_s22 = int_to_ptr.vmem [resolvable:$true] %s293_s22  ;;  %s292_s29 = int_to_ptr.hbm [resolvable:$true] %s291_s29 }
  0x25   : > { %p2269_p9 = pnand %p1841_p7, %p41_p3  ;;  %s282_s19 = scalar_lea.sflag [#allocation3], %s281_s14 }
  0x26   : > { %s2010_s20 = sshra.s32 %s292_s29, 4  ;;  %s2017_s16 = scalar_lea.hbm %s2475_s0, 256  ;;  %s2011_s20 = int_to_ptr.hbm [resolvable:$true] %s2010_s20 }
  0x27   : > { %s2012_s1 = scalar_lea.hbm %s2011_s20, 128  ;;  %p2014_p10 = pneg %p2269_p9 }
  0x28   : > { %p2013_p2 = scmp.ne.s32.totalorder %s2011_s20, %s2012_s1  ;;  %p2018_p0 = scmp.lt.s32.totalorder %s2011_s20, %s2475_s0 }
  0x29   : > { %p2019_p3 = scmp.lt.s32.totalorder %s2017_s16, %s2012_s1 }
  0x2a   : > { %p2015_p12 = pnand %p2014_p10, %p2013_p2 }
  0x2b   : > { %p2020_p7 = por %p2019_p3, %p2018_p0 }
  0x2c   : > { %p2016_p13 = pneg %p2015_p12 }
  0x2e   : > { %p2021_p11 = pnand %p2020_p7, %p2016_p13 }
  0x30   : > { %2024 = shalt.err (!%p2021_p11)
}
  0x31   : > { %s2493_s14 = smov 8   ;;  %s2494_s21 = smov 128  }
  0x32   : > { %1832 = dma.hbm_to_vmem [thread:$0]  (!%p2269_p9), %s292_s29, 2048, %s294_s22, %s282_s19, %s2494_s21, %s2494_s21, %s2493_s14  }
  0x33   : > { %305 = sbr.rel (%p2209_p8) target bundleno = 643 (0x283), region = 48  ;;  %s2289_s11 = sand.u32 (!%p2209_p8), 1, %s2106_s25  }
  0x34   : > { %s1463_s1 = sshll.u32 (!%p2209_p8), %s2289_s11, 7  ;;  %s308_s20 = scalar_lea.sflag (!%p2209_p8), [#allocation3], %s2289_s11 }
  0x35   : > { %s2295_s15 = scalar_lea.vmem (!%p2209_p8), [#allocation2], %s1463_s1 }
  0x38   : > { %2085 = dma.done.wait (%p2196_p4), %s308_s20, 2048  }
  0x39   : > { %2087 = vsyncadd (%p2196_p4), %s308_s20, 4294965248 }
  0x3a   : > { %2089 = dma.done.wait (%p46_p1), [#allocation6], 2080  }
  0x3b   : > { %2091 = vsyncadd (%p46_p1), [#allocation6], 4294965216 }
  0x3c   : > { %2093 = dma.done.wait (%p46_p1), [#allocation9], 6144  }
  0x3d   : > { %2095 = vsyncadd (%p46_p1), [#allocation9], 4294961152  ;;  %v1527_v0 = vld [vmem:[#allocation5 + $0x70] sm:$0xf]  ;;  %v1746_v1 = vld [vmem:[#allocation5 + $0x74] sm:$0xf0] }
  0x3e   : > { %v1745_v2 = vld [vmem:[#allocation5 + $0x74] sm:$0xf]  ;;  %v1528_v3 = vor.u32 %v1746_v1, %v1527_v0  ;;  %v1529_v4 = vld [vmem:[#allocation5 + $0x78] sm:$0xf0]  ;;  %v1519_v5 = vld [vmem:[#allocation5 + $0x60] sm:$0xf] }
  0x3f   : > { %v1744_v6 = vld [vmem:[#allocation5 + $0x64] sm:$0xf0]  ;;  %v1532_v7 = vor.u32 %v1745_v2, %v1529_v4  ;;  %v1743_v8 = vld [vmem:[#allocation5 + $0x64] sm:$0xf]  ;;  %v1521_v9 = vld [vmem:[#allocation5 + $0x68] sm:$0xf0] }
  0x40   : > { %491 = vmatpush.bf16.msra.mxu0 %v1528_v3  ;;  %v1520_v10 = vor.u32 %v1744_v6, %v1519_v5  ;;  %v1524_v11 = vor.u32 %v1743_v8, %v1521_v9  ;;  %v1511_v12 = vld [vmem:[#allocation5 + $0x50] sm:$0xf]  ;;  %v1742_v13 = vld [vmem:[#allocation5 + $0x54] sm:$0xf0]  ;;  %v1741_v14 = vld [vmem:[#allocation5 + $0x54] sm:$0xf] }
  0x41   : > { %540 = vmatpush.bf16.msra.mxu1 %v1532_v7  ;;  %v1513_v15 = vld [vmem:[#allocation5 + $0x58] sm:$0xf0]  ;;  %v1512_v16 = vor.u32 %v1742_v13, %v1511_v12  ;;  %v1503_v18 = vld [vmem:[#allocation5 + $0x40] sm:$0xf]  ;;  %v1740_v19 = vld [vmem:[#allocation5 + $0x44] sm:$0xf0] }
  0x42   : > { %v1516_v17 = vor.u32 %v1741_v14, %v1513_v15  ;;  %v1739_v20 = vld [vmem:[#allocation5 + $0x44] sm:$0xf]  ;;  %v1505_v21 = vld [vmem:[#allocation5 + $0x48] sm:$0xf0]  ;;  %v1504_v22 = vor.u32 %v1740_v19, %v1503_v18  ;;  %v1495_v24 = vld [vmem:[#allocation5 + $0x30] sm:$0xf] }
  0x43   : > { %v1508_v23 = vor.u32 %v1739_v20, %v1505_v21  ;;  %v1738_v25 = vld [vmem:[#allocation5 + $0x34] sm:$0xf0]  ;;  %v1737_v26 = vld [vmem:[#allocation5 + $0x34] sm:$0xf]  ;;  %v1497_v27 = vld [vmem:[#allocation5 + $0x38] sm:$0xf0] }
  0x44   : > { %492 = vmatpush.bf16.msra.mxu0 %v1520_v10  ;;  %v1496_v28 = vor.u32 %v1738_v25, %v1495_v24  ;;  %v1500_v29 = vor.u32 %v1737_v26, %v1497_v27  ;;  %v1487_v30 = vld [vmem:[#allocation5 + $0x20] sm:$0xf]  ;;  %v1736_v31 = vld [vmem:[#allocation5 + $0x24] sm:$0xf0]  ;;  %v1735_v32 = vld [vmem:[#allocation5 + $0x24] sm:$0xf] }
  0x45   : > { %541 = vmatpush.bf16.msra.mxu1 %v1524_v11  ;;  %v1489_v33 = vld [vmem:[#allocation5 + $0x28] sm:$0xf0]  ;;  %v1488_v34 = vor.u32 %v1736_v31, %v1487_v30  ;;  %v1479_v36 = vld [vmem:[#allocation5 + $0x10] sm:$0xf]  ;;  %v1734_v37 = vld [vmem:[#allocation5 + $0x14] sm:$0xf0] }
  0x46   : > { %v1492_v35 = vor.u32 %v1735_v32, %v1489_v33  ;;  %v1733_v38 = vld [vmem:[#allocation5 + $0x14] sm:$0xf]  ;;  %v1481_v39 = vld [vmem:[#allocation5 + $0x18] sm:$0xf0]  ;;  %v1480_v40 = vor.u32 %v1734_v37, %v1479_v36  ;;  %v1471_v42 = vld [vmem:[#allocation5] sm:$0xf] }
  0x47   : > { %v1484_v41 = vor.u32 %v1733_v38, %v1481_v39  ;;  %v1732_v43 = vld [vmem:[#allocation5 + $0x4] sm:$0xf0]  ;;  %v1731_v44 = vld [vmem:[#allocation5 + $0x4] sm:$0xf]  ;;  %v1473_v45 = vld [vmem:[#allocation5 + $0x8] sm:$0xf0] }
  0x48   : > { %493 = vmatpush.bf16.msra.mxu0 %v1512_v16  ;;  %v1761_v46 = vld [vmem:[#allocation8 + $0x74] sm:$0xf]  ;;  %v1593_v47 = vld [vmem:[#allocation8 + $0x78] sm:$0xf0]  ;;  %v1472_v50 = vor.u32 %v1732_v43, %v1471_v42  ;;  %v366_v52 = vld [vmem:[%s2295_s15 + $0x8] sm:$0xff]  ;;  %v1476_v53 = vor.u32 %v1731_v44, %v1473_v45  ;;  %s2408_s29 = scalar_lea.vmem [#allocation11], %s1463_s1 }
  0x49   : > { %542 = vmatpush.bf16.msra.mxu1 %v1516_v17  ;;  %v1777_v48 = vld [vmem:[#allocation8 + $0xf4] sm:$0xf]  ;;  %v1657_v49 = vld [vmem:[#allocation8 + $0xf8] sm:$0xf0]  ;;  %v1596_v54 = vor.u32 %v1761_v46, %v1593_v47  ;;  %v1759_v57 = vld [vmem:[#allocation8 + $0x64] sm:$0xf] }
  0x4a   : > { %v365_v51 = vld [vmem:[%s2295_s15] sm:$0xff]  ;;  %v1660_v55 = vor.u32 %v1777_v48, %v1657_v49  ;;  %v1585_v58 = vld [vmem:[#allocation8 + $0x68] sm:$0xf0]  ;;  %v368_v0 = vld [vmem:[%s2295_s15 + $0x18] sm:$0xff]  ;;  %s1795_s10 = sshll.u32 %s2187_s28, 7  ;;  %s1338_s14 = sshll.u32 %s2408_s29, 4  ;;  %s1339_s14 = int_to_ptr.vmem [resolvable:$true] %s1338_s14 }
  0x4b   : > { %v381_v56 = vpack.c.bf16 %v366_v52, %v365_v51  ;;  %v1775_v59 = vld [vmem:[#allocation8 + $0xe4] sm:$0xf]  ;;  %v1588_v60 = vor.u32 %v1759_v57, %v1585_v58  ;;  %v1649_v61 = vld [vmem:[#allocation8 + $0xe8] sm:$0xf0]  ;;  %v1757_v2 = vld [vmem:[#allocation8 + $0x54] sm:$0xf]  ;;  %s1337_s18 = scalar_lea.hbm %s2482_s7, %s1795_s10 }
  0x4c   : > { %494 = vmatpush.bf16.msra.mxu0 %v1504_v22  ;;  %v1652_v62 = vor.u32 %v1775_v59, %v1649_v61  ;;  %v367_v63 = vld [vmem:[%s2295_s15 + $0x10] sm:$0xff]  ;;  %v1577_v3 = vld [vmem:[#allocation8 + $0x58] sm:$0xf0]  ;;  %v370_v9 = vld [vmem:[%s2295_s15 + $0x28] sm:$0xff]  ;;  %s1340_s21 = sshll.u32 %s1337_s18, 4  ;;  %s1326_s1 = scalar_lea.sflag [#allocation4], %s2289_s11  ;;  %s1341_s21 = int_to_ptr.hbm [resolvable:$true] %s1340_s21 }
  0x4d   : > { %543 = vmatpush.bf16.msra.mxu1 %v1508_v23  ;;  %v382_v1 = vpack.c.bf16 %v368_v0, %v367_v63  ;;  %v1773_v4 = vld [vmem:[#allocation8 + $0xd4] sm:$0xf]  ;;  %v1580_v5 = vor.u32 %v1757_v2, %v1577_v3  ;;  %v1641_v6 = vld [vmem:[#allocation8 + $0xd8] sm:$0xf0]  ;;  %v1755_v11 = vld [vmem:[#allocation8 + $0x44] sm:$0xf] }
  0x4e   : > { %v1644_v7 = vor.u32 %v1773_v4, %v1641_v6  ;;  %v369_v8 = vld [vmem:[%s2295_s15 + $0x20] sm:$0xff]  ;;  %v1569_v12 = vld [vmem:[#allocation8 + $0x48] sm:$0xf0]  ;;  %v372_v18 = vld [vmem:[%s2295_s15 + $0x38] sm:$0xff]  ;;  %s2054_s20 = sshra.s32 %s1341_s21, 4  ;;  %s2060_s12 = scalar_lea.hbm %s2482_s7, 256  ;;  %s2055_s20 = int_to_ptr.hbm [resolvable:$true] %s2054_s20 }
  0x4f   : > { %v383_v10 = vpack.c.bf16 %v370_v9, %v369_v8  ;;  %v1771_v13 = vld [vmem:[#allocation8 + $0xc4] sm:$0xf]  ;;  %v1572_v14 = vor.u32 %v1755_v11, %v1569_v12  ;;  %v1633_v15 = vld [vmem:[#allocation8 + $0xc8] sm:$0xf0]  ;;  %v1753_v20 = vld [vmem:[#allocation8 + $0x34] sm:$0xf]  ;;  %p2061_p11 = scmp.lt.s32.totalorder %s2055_s20, %s2482_s7 }
  0x50   : > { %495 = vmatpush.bf16.msra.mxu0 %v1496_v28  ;;  %v1636_v16 = vor.u32 %v1771_v13, %v1633_v15  ;;  %v371_v17 = vld [vmem:[%s2295_s15 + $0x30] sm:$0xff]  ;;  %v1561_v21 = vld [vmem:[#allocation8 + $0x38] sm:$0xf0]  ;;  %v374_v27 = vld [vmem:[%s2295_s15 + $0x48] sm:$0xff]  ;;  %s2056_s28 = scalar_lea.hbm %s2055_s20, 128 }
  0x51   : > { %544 = vmatpush.bf16.msra.mxu1 %v1500_v29  ;;  %v384_v19 = vpack.c.bf16 %v372_v18, %v371_v17  ;;  %v1769_v22 = vld [vmem:[#allocation8 + $0xb4] sm:$0xf]  ;;  %v1564_v23 = vor.u32 %v1753_v20, %v1561_v21  ;;  %v1625_v24 = vld [vmem:[#allocation8 + $0xb8] sm:$0xf0]  ;;  %v1751_v29 = vld [vmem:[#allocation8 + $0x24] sm:$0xf]  ;;  %p2057_p1 = scmp.ne.s32.totalorder %s2055_s20, %s2056_s28  ;;  %p2062_p9 = scmp.lt.s32.totalorder %s2060_s12, %s2056_s28 }
  0x52   : > { %v1628_v25 = vor.u32 %v1769_v22, %v1625_v24  ;;  %v373_v26 = vld [vmem:[%s2295_s15 + $0x40] sm:$0xff]  ;;  %v1553_v30 = vld [vmem:[#allocation8 + $0x28] sm:$0xf0]  ;;  %v1655_v38 = vld [vmem:[#allocation8 + $0xf0] sm:$0xf] }
  0x53   : > { %v385_v28 = vpack.c.bf16 %v374_v27, %v373_v26  ;;  %v1767_v31 = vld [vmem:[#allocation8 + $0xa4] sm:$0xf]  ;;  %v1556_v32 = vor.u32 %v1751_v29, %v1553_v30  ;;  %v1617_v33 = vld [vmem:[#allocation8 + $0xa8] sm:$0xf0]  ;;  %v1778_v39 = vld [vmem:[#allocation8 + $0xf4] sm:$0xf0]  ;;  %p2058_p4 = pnand %p2057_p1, %p2259_p5  ;;  %p2063_p2 = por %p2062_p9, %p2061_p11 }
  0x54   : > { %496 = vmatpush.bf16.msra.mxu0 %v1488_v34  ;;  %v1591_v34 = vld [vmem:[#allocation8 + $0x70] sm:$0xf]  ;;  %v1620_v36 = vor.u32 %v1767_v31, %v1617_v33  ;;  %v376_v42 = vld [vmem:[%s2295_s15 + $0x58] sm:$0xff]  ;;  %v1583_v44 = vld [vmem:[#allocation8 + $0x60] sm:$0xf] }
  0x55   : > { %545 = vmatpush.bf16.msra.mxu1 %v1492_v35  ;;  %v1762_v35 = vld [vmem:[#allocation8 + $0x74] sm:$0xf0]  ;;  %v1760_v45 = vld [vmem:[#allocation8 + $0x64] sm:$0xf0]  ;;  %v1647_v46 = vld [vmem:[#allocation8 + $0xe0] sm:$0xf]  ;;  %p2059_p8 = pneg %p2058_p4 }
  0x56   : > { %v1592_v37 = vor.u32 %v1762_v35, %v1591_v34  ;;  %v1584_v47 = vor.u32 %v1760_v45, %v1583_v44  ;;  %v1776_v48 = vld [vmem:[#allocation8 + $0xe4] sm:$0xf0]  ;;  %v1545_v51 = vld [vmem:[#allocation8 + $0x18] sm:$0xf0]  ;;  %v1575_v52 = vld [vmem:[#allocation8 + $0x50] sm:$0xf] }
  0x57   : > { %v1648_v49 = vor.u32 %v1776_v48, %v1647_v46  ;;  %v1765_v59 = vld [vmem:[#allocation8 + $0x94] sm:$0xf]  ;;  %v1567_v61 = vld [vmem:[#allocation8 + $0x40] sm:$0xf]  ;;  %v1756_v63 = vld [vmem:[#allocation8 + $0x44] sm:$0xf0]  ;;  %p2064_p10 = pnand %p2063_p2, %p2059_p8 }
  0x58   : > { %497 = vmatpush.bf16.msra.mxu0 %v1480_v40  ;;  %v1656_v40 = vor.u32 %v1778_v39, %v1655_v38  ;;  %835 = vmatpush.bf16.msra.mxu2 %v1592_v37  ;;  %v1631_v0 = vld [vmem:[#allocation8 + $0xc0] sm:$0xf]  ;;  %v1568_v2 = vor.u32 %v1756_v63, %v1567_v61  ;;  %v1559_v6 = vld [vmem:[#allocation8 + $0x30] sm:$0xf]  ;;  %v1770_v11 = vld [vmem:[#allocation8 + $0xb4] sm:$0xf0] }
  0x59   : > { %546 = vmatpush.bf16.msra.mxu1 %v1484_v41  ;;  %v375_v41 = vld [vmem:[%s2295_s15 + $0x50] sm:$0xff]  ;;  %v377_v4 = vld [vmem:[%s2295_s15 + $0x60] sm:$0xff]  ;;  %v1768_v17 = vld [vmem:[#allocation8 + $0xa4] sm:$0xf0] }
  0x5a   : > { %884 = vmatpush.bf16.msra.mxu3 %v1656_v40  ;;  %v386_v43 = vpack.c.bf16 %v376_v42, %v375_v41  ;;  %v1623_v8 = vld [vmem:[#allocation8 + $0xb0] sm:$0xf]  ;;  %v1551_v13 = vld [vmem:[#allocation8 + $0x20] sm:$0xf]  ;;  %v1537_v20 = vld [vmem:[#allocation8 + $0x8] sm:$0xf0] }
  0x5b   : > { %v1624_v12 = vor.u32 %v1770_v11, %v1623_v8  ;;  %v1543_v22 = vld [vmem:[#allocation8 + $0x10] sm:$0xf]  ;;  %v1766_v26 = vld [vmem:[#allocation8 + $0x94] sm:$0xf0]  ;;  %v1601_v29 = vld [vmem:[#allocation8 + $0x88] sm:$0xf0] }
  0x5c   : > { %498 = vmatpush.bf16.msra.mxu0 %v1472_v50  ;;  %v1749_v50 = vld [vmem:[#allocation8 + $0x14] sm:$0xf]  ;;  %836 = vmatpush.bf16.msra.mxu2 %v1584_v47  ;;  %v1607_v24 = vld [vmem:[#allocation8 + $0x90] sm:$0xf]  ;;  %v1535_v30 = vld [vmem:[#allocation8] sm:$0xf] }
  0x5d   : > { %547 = vmatpush.bf16.msra.mxu1 %v1476_v53  ;;  %v1548_v53 = vor.u32 %v1749_v50, %v1545_v51  ;;  %v1608_v27 = vor.u32 %v1766_v26, %v1607_v24  ;;  %v1599_v33 = vld [vmem:[#allocation8 + $0x80] sm:$0xf]  ;;  %v1764_v34 = vld [vmem:[#allocation8 + $0x84] sm:$0xf0]  ;;  %v379_v35 = vld [vmem:[%s2295_s15 + $0x70] sm:$0xff] }
  0x5e   : > { %885 = vmatpush.bf16.msra.mxu3 %v1648_v49  ;;  %v1600_v38 = vor.u32 %v1764_v34, %v1599_v33  ;;  %v405_v40 = vld [vmem:[#allocation7] sm:$0x3]  ;;  %v1785_v61 = vld [vmem:[#allocation10 + $0x30] sm:$0xff] }
  0x5f   : > { %499 = vmatmul.bf16.vlgmr.msra.gmra.mxu0 %v381_v56  ;;  %v2327_v44 = vperm.slane %v405_v40, 1  ;;  %v1786_v45 = vld [vmem:[#allocation10 + $0x38] sm:$0xff] }
  0x60   : > { %933 = vmatpush.bf16.msrb.mxu0 %v1596_v54  ;;  %548 = vmatmul.bf16.vlgmr.msra.gmra.mxu1 %v381_v56  ;;  %v1758_v54 = vld [vmem:[#allocation8 + $0x54] sm:$0xf0] }
  0x61   : > { %982 = vmatpush.bf16.msrb.mxu1 %v1660_v55  ;;  %v1639_v55 = vld [vmem:[#allocation8 + $0xd0] sm:$0xf]  ;;  %v1774_v56 = vld [vmem:[#allocation8 + $0xd4] sm:$0xf0]  ;;  %v1576_v57 = vor.u32 %v1758_v54, %v1575_v52 }
  0x62   : > { %v1640_v58 = vor.u32 %v1774_v56, %v1639_v55  ;;  %v1794_v46 = vld [vmem:[#allocation10 + $0x78] sm:$0xff] }
  0x63   : > { %837 = vmatpush.bf16.msra.mxu2 %v1576_v57 }
  0x64   : > { %934 = vmatpush.bf16.msrb.mxu0 %v1588_v60  ;;  %v1609_v60 = vld [vmem:[#allocation8 + $0x98] sm:$0xf0]  ;;  %886 = vmatpush.bf16.msra.mxu3 %v1640_v58 }
  0x65   : > { %983 = vmatpush.bf16.msrb.mxu1 %v1652_v62  ;;  %v1612_v62 = vor.u32 %v1765_v59, %v1609_v60 }
  0x67   : > { %838 = vmatpush.bf16.msra.mxu2 %v1568_v2 }
  0x68   : > { %935 = vmatpush.bf16.msrb.mxu0 %v1580_v5  ;;  %v378_v5 = vld [vmem:[%s2295_s15 + $0x68] sm:$0xff] }
  0x69   : > { %984 = vmatpush.bf16.msrb.mxu1 %v1644_v7  ;;  %v1754_v7 = vld [vmem:[#allocation8 + $0x34] sm:$0xf0]  ;;  %v387_v9 = vpack.c.bf16 %v378_v5, %v377_v4 }
  0x6c   : > { %936 = vmatpush.bf16.msrb.mxu0 %v1572_v14  ;;  %v1752_v14 = vld [vmem:[#allocation8 + $0x24] sm:$0xf0] }
  0x6d   : > { %985 = vmatpush.bf16.msrb.mxu1 %v1636_v16  ;;  %v1552_v15 = vor.u32 %v1752_v14, %v1551_v13  ;;  %v1615_v16 = vld [vmem:[#allocation8 + $0xa0] sm:$0xf]  ;;  %v1784_v13 = vld [vmem:[#allocation10 + $0x28] sm:$0xff] }
  0x6e   : > { %v1616_v18 = vor.u32 %v1768_v17, %v1615_v16  ;;  %v1792_v14 = vld [vmem:[#allocation10 + $0x68] sm:$0xff] }
  0x6f   : > { %504 = vmatmul.bf16.gmra.mxu0 %v382_v1 }
  0x70   : > { %553 = vmatmul.bf16.gmra.mxu1 %v382_v1  ;;  %937 = vmatpush.bf16.msrb.mxu0 %v1564_v23  ;;  %v1772_v1 = vld [vmem:[#allocation8 + $0xc4] sm:$0xf0]  ;;  %v1750_v23 = vld [vmem:[#allocation8 + $0x14] sm:$0xf0] }
  0x71   : > { %986 = vmatpush.bf16.msrb.mxu1 %v1628_v25  ;;  %v1632_v3 = vor.u32 %v1772_v1, %v1631_v0  ;;  %v1544_v25 = vor.u32 %v1750_v23, %v1543_v22 }
  0x73   : > { %887 = vmatpush.bf16.msra.mxu3 %v1632_v3 }
  0x74   : > { %938 = vmatpush.bf16.msrb.mxu0 %v1556_v32  ;;  %v1748_v32 = vld [vmem:[#allocation8 + $0x4] sm:$0xf0] }
  0x75   : > { %987 = vmatpush.bf16.msrb.mxu1 %v1620_v36  ;;  %v380_v36 = vld [vmem:[%s2295_s15 + $0x78] sm:$0xff]  ;;  %v1536_v37 = vor.u32 %v1748_v32, %v1535_v30  ;;  %v1791_v30 = vld [vmem:[#allocation10 + $0x60] sm:$0xff] }
  0x76   : > { %v388_v39 = vpack.c.bf16 %v380_v36, %v379_v35 }
  0x77   : > { %888 = vmatpush.bf16.msra.mxu3 %v1624_v12 }
  0x78   : > { %939 = vmatpush.bf16.msrb.mxu0 %v1548_v53 }
  0x79   : > { %988 = vmatpush.bf16.msrb.mxu1 %v1612_v62  ;;  %v1793_v62 = vld [vmem:[#allocation10 + $0x70] sm:$0xff] }
  0x7b   : > { %889 = vmatpush.bf16.msra.mxu3 %v1616_v18 }
  0x7f   : > { %509 = vmatmul.bf16.gmra.mxu0 %v383_v10  ;;  %890 = vmatpush.bf16.msra.mxu3 %v1608_v27 }
  0x80   : > { %558 = vmatmul.bf16.gmra.mxu1 %v383_v10  ;;  %v1560_v10 = vor.u32 %v1754_v7, %v1559_v6 }
  0x82   : > { %839 = vmatpush.bf16.msra.mxu2 %v1560_v10 }
  0x83   : > { %891 = vmatpush.bf16.msra.mxu3 %v1600_v38 }
  0x86   : > { %840 = vmatpush.bf16.msra.mxu2 %v1552_v15 }
  0x87   : > { %1260 = vmatpush.bf16.msrb.mxu3 %v1794_v46 }
  0x8a   : > { %841 = vmatpush.bf16.msra.mxu2 %v1544_v25 }
  0x8b   : > { %1261 = vmatpush.bf16.msrb.mxu3 %v1793_v62 }
  0x8e   : > { %842 = vmatpush.bf16.msra.mxu2 %v1536_v37 }
  0x8f   : > { %514 = vmatmul.bf16.gmra.mxu0 %v384_v19  ;;  %1262 = vmatpush.bf16.msrb.mxu3 %v1792_v14  ;;  %v1780_v14 = vld [vmem:[#allocation10 + $0x8] sm:$0xff] }
  0x90   : > { %563 = vmatmul.bf16.gmra.mxu1 %v384_v19  ;;  %v1747_v19 = vld [vmem:[#allocation8 + $0x4] sm:$0xf] }
  0x91   : > { %v1540_v21 = vor.u32 %v1747_v19, %v1537_v20 }
  0x92   : > { %1211 = vmatpush.bf16.msrb.mxu2 %v1786_v45 }
  0x93   : > { %940 = vmatpush.bf16.msrb.mxu0 %v1540_v21  ;;  %1263 = vmatpush.bf16.msrb.mxu3 %v1791_v30 }
  0x96   : > { %1212 = vmatpush.bf16.msrb.mxu2 %v1785_v61 }
  0x9a   : > { %1213 = vmatpush.bf16.msrb.mxu2 %v1784_v13 }
  0x9f   : > { %519 = vmatmul.bf16.gmra.mxu0 %v385_v28 }
  0xa0   : > { %568 = vmatmul.bf16.gmra.mxu1 %v385_v28  ;;  %v1763_v28 = vld [vmem:[#allocation8 + $0x84] sm:$0xf] }
  0xa1   : > { %v1604_v31 = vor.u32 %v1763_v28, %v1601_v29  ;;  %v1783_v29 = vld [vmem:[#allocation10 + $0x20] sm:$0xff] }
  0xa2   : > { %1214 = vmatpush.bf16.msrb.mxu2 %v1783_v29 }
  0xa3   : > { %989 = vmatpush.bf16.msrb.mxu1 %v1604_v31 }
  0xaf   : > { %524 = vmatmul.bf16.gmra.mxu0 %v386_v43 }
  0xb0   : > { %573 = vmatmul.bf16.gmra.mxu1 %v386_v43  ;;  %v2325_v43 = vperm.slane %v405_v40, 0 }
  0xbf   : > { %529 = vmatmul.bf16.gmra.mxu0 %v387_v9 }
  0xc0   : > { %578 = vmatmul.bf16.gmra.mxu1 %v387_v9 }
  0xcf   : > { %534 = vmatmul.bf16.gmra.mxu0 %v388_v39 }
  0xd0   : > { %583 = vmatmul.bf16.gmra.mxu1 %v388_v39 }
  0xdc   : > { %v500_v41 = vpop.f32.mrf.mxu0 }
  0xdd   : > { %v549_v42 = vpop.f32.mrf.mxu1  ;;  %v501_v47 = vadd.f32 %v500_v41, %v2325_v43 }
  0xde   : > { %v550_v48 = vadd.f32 %v549_v42, %v2327_v44 }
  0xdf   : > { %v589_v53 = vmax.f32 %v501_v47, 0.0  ;;  %v1782_v47 = vld [vmem:[#allocation10 + $0x18] sm:$0xff] }
  0xe0   : > { %v590_v55 = vmax.f32 %v550_v48, 0.0  ;;  %v1790_v48 = vld [vmem:[#allocation10 + $0x58] sm:$0xff]  ;;  %1215 = vmatpush.bf16.msrb.mxu2 %v1782_v47 }
  0xe1   : > { %1264 = vmatpush.bf16.msrb.mxu3 %v1790_v48 }
  0xe4   : > { %v502_v49 = vpop.f32.mrf.mxu0 }
  0xe5   : > { %v503_v50 = vadd.f32 %v502_v49, %v2325_v43  ;;  %v551_v51 = vpop.f32.mrf.mxu1 }
  0xe6   : > { %v552_v52 = vadd.f32 %v551_v51, %v2327_v44 }
  0xe7   : > { %v591_v54 = vmax.f32 %v503_v50, 0.0 }
  0xe8   : > { %v592_v56 = vmax.f32 %v552_v52, 0.0 }
  0xe9   : > { %v621_v57 = vpack.c.bf16 %v591_v54, %v589_v53 }
  0xea   : > { %v622_v58 = vpack.c.bf16 %v592_v56, %v590_v55 }
  0xeb   : > { %843 = vmatmul.bf16.vlgmr.msra.gmra.mxu2 %v621_v57  ;;  %941 = vmatmul.bf16.vlgmr.msrb.gmra.mxu0 %v621_v57 }
  0xec   : > { %892 = vmatmul.bf16.vlgmr.msra.gmra.mxu3 %v622_v58  ;;  %990 = vmatmul.bf16.vlgmr.msrb.gmra.mxu1 %v622_v58  ;;  %v505_v59 = vpop.f32.mrf.mxu0 }
  0xed   : > { %v554_v60 = vpop.f32.mrf.mxu1  ;;  %v506_v63 = vadd.f32 %v505_v59, %v2325_v43 }
  0xee   : > { %v555_v0 = vadd.f32 %v554_v60, %v2327_v44 }
  0xef   : > { %v593_v5 = vmax.f32 %v506_v63, 0.0  ;;  %v1781_v63 = vld [vmem:[#allocation10 + $0x10] sm:$0xff] }
  0xf0   : > { %v594_v7 = vmax.f32 %v555_v0, 0.0  ;;  %v1789_v0 = vld [vmem:[#allocation10 + $0x50] sm:$0xff]  ;;  %1216 = vmatpush.bf16.msrb.mxu2 %v1781_v63 }
  0xf1   : > { %1265 = vmatpush.bf16.msrb.mxu3 %v1789_v0 }
  0xf4   : > { %v507_v1 = vpop.f32.mrf.mxu0  ;;  %1217 = vmatpush.bf16.msrb.mxu2 %v1780_v14 }
  0xf5   : > { %v508_v2 = vadd.f32 %v507_v1, %v2325_v43  ;;  %v556_v3 = vpop.f32.mrf.mxu1 }
  0xf6   : > { %v557_v4 = vadd.f32 %v556_v3, %v2327_v44 }
  0xf7   : > { %v595_v6 = vmax.f32 %v508_v2, 0.0 }
  0xf8   : > { %v596_v8 = vmax.f32 %v557_v4, 0.0 }
  0xf9   : > { %v623_v9 = vpack.c.bf16 %v595_v6, %v593_v5 }
  0xfa   : > { %v624_v10 = vpack.c.bf16 %v596_v8, %v594_v7 }
  0xfb   : > { %848 = vmatmul.bf16.gmra.mxu2 %v623_v9  ;;  %946 = vmatmul.bf16.gmra.mxu0 %v623_v9 }
  0xfc   : > { %897 = vmatmul.bf16.gmra.mxu3 %v624_v10  ;;  %995 = vmatmul.bf16.gmra.mxu1 %v624_v10  ;;  %v510_v11 = vpop.f32.mrf.mxu0 }
  0xfd   : > { %v559_v12 = vpop.f32.mrf.mxu1  ;;  %v511_v15 = vadd.f32 %v510_v11, %v2325_v43 }
  0xfe   : > { %v560_v16 = vadd.f32 %v559_v12, %v2327_v44 }
  0xff   : > { %v597_v21 = vmax.f32 %v511_v15, 0.0  ;;  %v1788_v15 = vld [vmem:[#allocation10 + $0x48] sm:$0xff] }
 0x100   : > { %v598_v23 = vmax.f32 %v560_v16, 0.0  ;;  %1266 = vmatpush.bf16.msrb.mxu3 %v1788_v15 }
 0x104   : > { %v512_v17 = vpop.f32.mrf.mxu0 }
 0x105   : > { %v513_v18 = vadd.f32 %v512_v17, %v2325_v43  ;;  %v561_v19 = vpop.f32.mrf.mxu1 }
 0x106   : > { %v562_v20 = vadd.f32 %v561_v19, %v2327_v44 }
 0x107   : > { %v599_v22 = vmax.f32 %v513_v18, 0.0 }
 0x108   : > { %v600_v24 = vmax.f32 %v562_v20, 0.0 }
 0x109   : > { %v625_v25 = vpack.c.bf16 %v599_v22, %v597_v21 }
 0x10a   : > { %v626_v26 = vpack.c.bf16 %v600_v24, %v598_v23 }
 0x10b   : > { %853 = vmatmul.bf16.gmra.mxu2 %v625_v25  ;;  %951 = vmatmul.bf16.gmra.mxu0 %v625_v25 }
 0x10c   : > { %902 = vmatmul.bf16.gmra.mxu3 %v626_v26  ;;  %1000 = vmatmul.bf16.gmra.mxu1 %v626_v26  ;;  %v515_v27 = vpop.f32.mrf.mxu0 }
 0x10d   : > { %v564_v28 = vpop.f32.mrf.mxu1  ;;  %v516_v31 = vadd.f32 %v515_v27, %v2325_v43 }
 0x10e   : > { %v565_v32 = vadd.f32 %v564_v28, %v2327_v44 }
 0x10f   : > { %v601_v37 = vmax.f32 %v516_v31, 0.0 }
 0x110   : > { %v602_v39 = vmax.f32 %v565_v32, 0.0  ;;  %v1779_v32 = vld [vmem:[#allocation10] sm:$0xff] }
 0x111   : > { %1218 = vmatpush.bf16.msrb.mxu2 %v1779_v32 }
 0x114   : > { %v517_v33 = vpop.f32.mrf.mxu0 }
 0x115   : > { %v518_v34 = vadd.f32 %v517_v33, %v2325_v43  ;;  %v566_v35 = vpop.f32.mrf.mxu1 }
 0x116   : > { %v567_v36 = vadd.f32 %v566_v35, %v2327_v44 }
 0x117   : > { %v603_v38 = vmax.f32 %v518_v34, 0.0 }
 0x118   : > { %v604_v40 = vmax.f32 %v567_v36, 0.0 }
 0x119   : > { %v627_v41 = vpack.c.bf16 %v603_v38, %v601_v37  ;;  %v1787_v37 = vld [vmem:[#allocation10 + $0x40] sm:$0xff] }
 0x11a   : > { %v628_v42 = vpack.c.bf16 %v604_v40, %v602_v39  ;;  %1267 = vmatpush.bf16.msrb.mxu3 %v1787_v37 }
 0x11b   : > { %858 = vmatmul.bf16.gmra.mxu2 %v627_v41  ;;  %956 = vmatmul.bf16.gmra.mxu0 %v627_v41 }
 0x11c   : > { %907 = vmatmul.bf16.gmra.mxu3 %v628_v42  ;;  %1005 = vmatmul.bf16.gmra.mxu1 %v628_v42  ;;  %v520_v45 = vpop.f32.mrf.mxu0 }
 0x11d   : > { %v569_v46 = vpop.f32.mrf.mxu1  ;;  %v521_v49 = vadd.f32 %v520_v45, %v2325_v43 }
 0x11e   : > { %v570_v50 = vadd.f32 %v569_v46, %v2327_v44 }
 0x11f   : > { %v605_v55 = vmax.f32 %v521_v49, 0.0 }
 0x120   : > { %v606_v57 = vmax.f32 %v570_v50, 0.0 }
 0x124   : > { %v522_v51 = vpop.f32.mrf.mxu0 }
 0x125   : > { %v523_v52 = vadd.f32 %v522_v51, %v2325_v43  ;;  %v571_v53 = vpop.f32.mrf.mxu1 }
 0x126   : > { %v572_v54 = vadd.f32 %v571_v53, %v2327_v44 }
 0x127   : > { %v607_v56 = vmax.f32 %v523_v52, 0.0 }
 0x128   : > { %v608_v58 = vmax.f32 %v572_v54, 0.0 }
 0x129   : > { %v629_v59 = vpack.c.bf16 %v607_v56, %v605_v55 }
 0x12a   : > { %v630_v60 = vpack.c.bf16 %v608_v58, %v606_v57 }
 0x12b   : > { %863 = vmatmul.bf16.gmra.mxu2 %v629_v59  ;;  %961 = vmatmul.bf16.gmra.mxu0 %v629_v59 }
 0x12c   : > { %912 = vmatmul.bf16.gmra.mxu3 %v630_v60  ;;  %1010 = vmatmul.bf16.gmra.mxu1 %v630_v60  ;;  %v525_v61 = vpop.f32.mrf.mxu0 }
 0x12d   : > { %v574_v62 = vpop.f32.mrf.mxu1  ;;  %v526_v1 = vadd.f32 %v525_v61, %v2325_v43 }
 0x12e   : > { %v575_v2 = vadd.f32 %v574_v62, %v2327_v44 }
 0x12f   : > { %v609_v7 = vmax.f32 %v526_v1, 0.0 }
 0x130   : > { %v610_v9 = vmax.f32 %v575_v2, 0.0 }
 0x134   : > { %v527_v3 = vpop.f32.mrf.mxu0 }
 0x135   : > { %v528_v4 = vadd.f32 %v527_v3, %v2325_v43  ;;  %v576_v5 = vpop.f32.mrf.mxu1 }
 0x136   : > { %v577_v6 = vadd.f32 %v576_v5, %v2327_v44 }
 0x137   : > { %v611_v8 = vmax.f32 %v528_v4, 0.0 }
 0x138   : > { %v612_v10 = vmax.f32 %v577_v6, 0.0 }
 0x139   : > { %v631_v11 = vpack.c.bf16 %v611_v8, %v609_v7 }
 0x13a   : > { %v632_v12 = vpack.c.bf16 %v612_v10, %v610_v9 }
 0x13b   : > { %868 = vmatmul.bf16.gmra.mxu2 %v631_v11  ;;  %966 = vmatmul.bf16.gmra.mxu0 %v631_v11 }
 0x13c   : > { %917 = vmatmul.bf16.gmra.mxu3 %v632_v12  ;;  %1015 = vmatmul.bf16.gmra.mxu1 %v632_v12  ;;  %v530_v13 = vpop.f32.mrf.mxu0 }
 0x13d   : > { %v579_v16 = vpop.f32.mrf.mxu1  ;;  %v531_v17 = vadd.f32 %v530_v13, %v2325_v43 }
 0x13e   : > { %v580_v18 = vadd.f32 %v579_v16, %v2327_v44 }
 0x13f   : > { %v613_v23 = vmax.f32 %v531_v17, 0.0 }
 0x140   : > { %v614_v25 = vmax.f32 %v580_v18, 0.0 }
 0x144   : > { %v532_v19 = vpop.f32.mrf.mxu0 }
 0x145   : > { %v533_v20 = vadd.f32 %v532_v19, %v2325_v43  ;;  %v581_v21 = vpop.f32.mrf.mxu1 }
 0x146   : > { %v582_v22 = vadd.f32 %v581_v21, %v2327_v44 }
 0x147   : > { %v615_v24 = vmax.f32 %v533_v20, 0.0 }
 0x148   : > { %v616_v26 = vmax.f32 %v582_v22, 0.0 }
 0x149   : > { %v633_v27 = vpack.c.bf16 %v615_v24, %v613_v23 }
 0x14a   : > { %v634_v28 = vpack.c.bf16 %v616_v26, %v614_v25 }
 0x14b   : > { %873 = vmatmul.bf16.gmra.mxu2 %v633_v27  ;;  %971 = vmatmul.bf16.gmra.mxu0 %v633_v27 }
 0x14c   : > { %922 = vmatmul.bf16.gmra.mxu3 %v634_v28  ;;  %1020 = vmatmul.bf16.gmra.mxu1 %v634_v28  ;;  %v535_v29 = vpop.f32.mrf.mxu0 }
 0x14d   : > { %v584_v30 = vpop.f32.mrf.mxu1  ;;  %v536_v31 = vadd.f32 %v535_v29, %v2325_v43 }
 0x14e   : > { %v585_v33 = vadd.f32 %v584_v30, %v2327_v44 }
 0x14f   : > { %v617_v39 = vmax.f32 %v536_v31, 0.0 }
 0x150   : > { %v618_v41 = vmax.f32 %v585_v33, 0.0 }
 0x154   : > { %v537_v34 = vpop.f32.mrf.mxu0 }
 0x155   : > { %v538_v35 = vadd.f32 %v537_v34, %v2325_v43  ;;  %v586_v36 = vpop.f32.mrf.mxu1  ;;  %v669_v43 = vld [vmem:[%s2479_s4] sm:$0x3] }
 0x156   : > { %v587_v38 = vadd.f32 %v586_v36, %v2327_v44  ;;  %v2364_v48 = vperm.slane %v669_v43, 1  ;;  %v2367_v51 = vperm.slane %v669_v43, 0 }
 0x157   : > { %v619_v40 = vmax.f32 %v538_v35, 0.0 }
 0x158   : > { %v620_v42 = vmax.f32 %v587_v38, 0.0 }
 0x159   : > { %v635_v45 = vpack.c.bf16 %v619_v40, %v617_v39 }
 0x15a   : > { %v636_v46 = vpack.c.bf16 %v620_v42, %v618_v41 }
 0x15b   : > { %878 = vmatmul.bf16.gmra.mxu2 %v635_v45  ;;  %976 = vmatmul.bf16.gmra.mxu0 %v635_v45 }
 0x15c   : > { %927 = vmatmul.bf16.gmra.mxu3 %v636_v46  ;;  %1025 = vmatmul.bf16.gmra.mxu1 %v636_v46 }
 0x168   : > { %v942_v47 = vpop.f32.mrf.mxu0 }
 0x169   : > { %v991_v49 = vpop.f32.mrf.mxu1  ;;  %v943_v44 = vadd.f32 %v942_v47, %v2364_v48 }
 0x16b   : > { %v992_v54 = vadd.f32 %v991_v49, %v943_v44 }
 0x16d   : > { %v1032_v59 = vmax.f32 %v992_v54, 0.0 }
 0x16e   : > { %v844_v50 = vpop.f32.mrf.mxu2 }
 0x16f   : > { %v893_v52 = vpop.f32.mrf.mxu3  ;;  %v845_v57 = vadd.f32 %v844_v50, %v2367_v51 }
 0x170   : > { %v944_v53 = vpop.f32.mrf.mxu0 }
 0x171   : > { %v945_v55 = vadd.f32 %v944_v53, %v2364_v48  ;;  %v993_v56 = vpop.f32.mrf.mxu1  ;;  %v894_v62 = vadd.f32 %v893_v52, %v845_v57 }
 0x173   : > { %v994_v58 = vadd.f32 %v993_v56, %v945_v55  ;;  %v1031_v5 = vmax.f32 %v894_v62, 0.0 }
 0x175   : > { %v1034_v60 = vmax.f32 %v994_v58, 0.0 }
 0x176   : > { %v846_v61 = vpop.f32.mrf.mxu2 }
 0x177   : > { %v1064_v63 = vpack.c.bf16 %v1034_v60, %v1032_v59  ;;  %v847_v0 = vadd.f32 %v846_v61, %v2367_v51  ;;  %v895_v1 = vpop.f32.mrf.mxu3 }
 0x178   : > { %v947_v2 = vpop.f32.mrf.mxu0 }
 0x179   : > { %v896_v3 = vadd.f32 %v895_v1, %v847_v0  ;;  %v996_v4 = vpop.f32.mrf.mxu1  ;;  %1268 = vmatmul.bf16.vlgmr.msrb.gmra.mxu3 %v1064_v63  ;;  %v948_v7 = vadd.f32 %v947_v2, %v2364_v48 }
 0x17b   : > { %v1033_v6 = vmax.f32 %v896_v3, 0.0  ;;  %v997_v12 = vadd.f32 %v996_v4, %v948_v7 }
 0x17d   : > { %v1063_v8 = vpack.c.bf16 %v1033_v6, %v1031_v5  ;;  %v1036_v17 = vmax.f32 %v997_v12, 0.0 }
 0x17e   : > { %v849_v9 = vpop.f32.mrf.mxu2 }
 0x17f   : > { %v898_v10 = vpop.f32.mrf.mxu3  ;;  %1219 = vmatmul.bf16.vlgmr.msrb.gmra.mxu2 %v1063_v8  ;;  %v850_v15 = vadd.f32 %v849_v9, %v2367_v51 }
 0x180   : > { %v949_v11 = vpop.f32.mrf.mxu0 }
 0x181   : > { %v950_v13 = vadd.f32 %v949_v11, %v2364_v48  ;;  %v998_v14 = vpop.f32.mrf.mxu1  ;;  %v899_v20 = vadd.f32 %v898_v10, %v850_v15 }
 0x183   : > { %v999_v16 = vadd.f32 %v998_v14, %v950_v13  ;;  %v1035_v27 = vmax.f32 %v899_v20, 0.0 }
 0x185   : > { %v1038_v18 = vmax.f32 %v999_v16, 0.0 }
 0x186   : > { %v851_v19 = vpop.f32.mrf.mxu2 }
 0x187   : > { %v852_v21 = vadd.f32 %v851_v19, %v2367_v51  ;;  %v900_v22 = vpop.f32.mrf.mxu3  ;;  %v1066_v23 = vpack.c.bf16 %v1038_v18, %v1036_v17 }
 0x188   : > { %v952_v24 = vpop.f32.mrf.mxu0 }
 0x189   : > { %v901_v25 = vadd.f32 %v900_v22, %v852_v21  ;;  %v1001_v26 = vpop.f32.mrf.mxu1  ;;  %1273 = vmatmul.bf16.gmra.mxu3 %v1066_v23  ;;  %v953_v29 = vadd.f32 %v952_v24, %v2364_v48 }
 0x18b   : > { %v1037_v28 = vmax.f32 %v901_v25, 0.0  ;;  %v1002_v34 = vadd.f32 %v1001_v26, %v953_v29 }
 0x18d   : > { %v1065_v30 = vpack.c.bf16 %v1037_v28, %v1035_v27  ;;  %v1040_v39 = vmax.f32 %v1002_v34, 0.0 }
 0x18e   : > { %v854_v31 = vpop.f32.mrf.mxu2 }
 0x18f   : > { %v903_v32 = vpop.f32.mrf.mxu3  ;;  %1224 = vmatmul.bf16.gmra.mxu2 %v1065_v30  ;;  %v855_v37 = vadd.f32 %v854_v31, %v2367_v51 }
 0x190   : > { %v954_v33 = vpop.f32.mrf.mxu0 }
 0x191   : > { %v955_v35 = vadd.f32 %v954_v33, %v2364_v48  ;;  %v1003_v36 = vpop.f32.mrf.mxu1  ;;  %v904_v42 = vadd.f32 %v903_v32, %v855_v37 }
 0x193   : > { %v1004_v38 = vadd.f32 %v1003_v36, %v955_v35  ;;  %v1039_v50 = vmax.f32 %v904_v42, 0.0 }
 0x195   : > { %v1042_v40 = vmax.f32 %v1004_v38, 0.0 }
 0x196   : > { %v856_v41 = vpop.f32.mrf.mxu2 }
 0x197   : > { %v857_v45 = vadd.f32 %v856_v41, %v2367_v51  ;;  %v905_v46 = vpop.f32.mrf.mxu3  ;;  %v1068_v43 = vpack.c.bf16 %v1042_v40, %v1040_v39 }
 0x198   : > { %v957_v47 = vpop.f32.mrf.mxu0 }
 0x199   : > { %v906_v49 = vadd.f32 %v905_v46, %v857_v45  ;;  %v1006_v44 = vpop.f32.mrf.mxu1  ;;  %1278 = vmatmul.bf16.gmra.mxu3 %v1068_v43  ;;  %v958_v53 = vadd.f32 %v957_v47, %v2364_v48 }
 0x19b   : > { %v1041_v52 = vmax.f32 %v906_v49, 0.0  ;;  %v1007_v58 = vadd.f32 %v1006_v44, %v958_v53 }
 0x19d   : > { %v1067_v54 = vpack.c.bf16 %v1041_v52, %v1039_v50  ;;  %v1044_v63 = vmax.f32 %v1007_v58, 0.0 }
 0x19e   : > { %v859_v55 = vpop.f32.mrf.mxu2 }
 0x19f   : > { %v908_v56 = vpop.f32.mrf.mxu3  ;;  %1229 = vmatmul.bf16.gmra.mxu2 %v1067_v54  ;;  %v860_v61 = vadd.f32 %v859_v55, %v2367_v51 }
 0x1a0   : > { %v959_v57 = vpop.f32.mrf.mxu0 }
 0x1a1   : > { %v960_v59 = vadd.f32 %v959_v57, %v2364_v48  ;;  %v1008_v60 = vpop.f32.mrf.mxu1  ;;  %v909_v2 = vadd.f32 %v908_v56, %v860_v61 }
 0x1a3   : > { %v1009_v62 = vadd.f32 %v1008_v60, %v960_v59  ;;  %v1043_v9 = vmax.f32 %v909_v2, 0.0 }
 0x1a5   : > { %v1046_v0 = vmax.f32 %v1009_v62, 0.0 }
 0x1a6   : > { %v861_v1 = vpop.f32.mrf.mxu2 }
 0x1a7   : > { %v862_v3 = vadd.f32 %v861_v1, %v2367_v51  ;;  %v910_v4 = vpop.f32.mrf.mxu3  ;;  %v1070_v5 = vpack.c.bf16 %v1046_v0, %v1044_v63 }
 0x1a8   : > { %v962_v6 = vpop.f32.mrf.mxu0 }
 0x1a9   : > { %v911_v7 = vadd.f32 %v910_v4, %v862_v3  ;;  %v1011_v8 = vpop.f32.mrf.mxu1  ;;  %1283 = vmatmul.bf16.gmra.mxu3 %v1070_v5  ;;  %v963_v11 = vadd.f32 %v962_v6, %v2364_v48 }
 0x1ab   : > { %v1045_v10 = vmax.f32 %v911_v7, 0.0  ;;  %v1012_v16 = vadd.f32 %v1011_v8, %v963_v11 }
 0x1ad   : > { %v1069_v12 = vpack.c.bf16 %v1045_v10, %v1043_v9  ;;  %v1048_v21 = vmax.f32 %v1012_v16, 0.0 }
 0x1ae   : > { %v864_v13 = vpop.f32.mrf.mxu2 }
 0x1af   : > { %v913_v14 = vpop.f32.mrf.mxu3  ;;  %1234 = vmatmul.bf16.gmra.mxu2 %v1069_v12  ;;  %v865_v19 = vadd.f32 %v864_v13, %v2367_v51 }
 0x1b0   : > { %v964_v15 = vpop.f32.mrf.mxu0 }
 0x1b1   : > { %v965_v17 = vadd.f32 %v964_v15, %v2364_v48  ;;  %v1013_v18 = vpop.f32.mrf.mxu1  ;;  %v914_v24 = vadd.f32 %v913_v14, %v865_v19 }
 0x1b3   : > { %v1014_v20 = vadd.f32 %v1013_v18, %v965_v17  ;;  %v1047_v31 = vmax.f32 %v914_v24, 0.0 }
 0x1b5   : > { %v1050_v22 = vmax.f32 %v1014_v20, 0.0 }
 0x1b6   : > { %v866_v23 = vpop.f32.mrf.mxu2 }
 0x1b7   : > { %v1072_v25 = vpack.c.bf16 %v1050_v22, %v1048_v21  ;;  %v867_v26 = vadd.f32 %v866_v23, %v2367_v51  ;;  %v915_v27 = vpop.f32.mrf.mxu3 }
 0x1b8   : > { %v967_v28 = vpop.f32.mrf.mxu0 }
 0x1b9   : > { %v916_v29 = vadd.f32 %v915_v27, %v867_v26  ;;  %v1016_v30 = vpop.f32.mrf.mxu1  ;;  %1288 = vmatmul.bf16.gmra.mxu3 %v1072_v25  ;;  %v968_v34 = vadd.f32 %v967_v28, %v2364_v48 }
 0x1bb   : > { %v1049_v32 = vmax.f32 %v916_v29, 0.0  ;;  %v1017_v38 = vadd.f32 %v1016_v30, %v968_v34 }
 0x1bd   : > { %v1071_v33 = vpack.c.bf16 %v1049_v32, %v1047_v31  ;;  %v1052_v45 = vmax.f32 %v1017_v38, 0.0 }
 0x1be   : > { %v869_v35 = vpop.f32.mrf.mxu2 }
 0x1bf   : > { %v918_v36 = vpop.f32.mrf.mxu3  ;;  %1239 = vmatmul.bf16.gmra.mxu2 %v1071_v33  ;;  %v870_v41 = vadd.f32 %v869_v35, %v2367_v51 }
 0x1c0   : > { %v969_v37 = vpop.f32.mrf.mxu0 }
 0x1c1   : > { %v970_v39 = vadd.f32 %v969_v37, %v2364_v48  ;;  %v1018_v40 = vpop.f32.mrf.mxu1  ;;  %v919_v47 = vadd.f32 %v918_v36, %v870_v41  ;;  %v2403_v36 = vld [vmem:[%s2481_s6] ss:$0 sm:$0xff] }
 0x1c3   : > { %v1019_v42 = vadd.f32 %v1018_v40, %v970_v39  ;;  %v1051_v55 = vmax.f32 %v919_v47, 0.0 }
 0x1c5   : > { %v1054_v46 = vmax.f32 %v1019_v42, 0.0 }
 0x1c6   : > { %v871_v43 = vpop.f32.mrf.mxu2 }
 0x1c7   : > { %v1074_v49 = vpack.c.bf16 %v1054_v46, %v1052_v45  ;;  %v872_v44 = vadd.f32 %v871_v43, %v2367_v51  ;;  %v920_v50 = vpop.f32.mrf.mxu3 }
 0x1c8   : > { %v972_v52 = vpop.f32.mrf.mxu0 }
 0x1c9   : > { %v921_v53 = vadd.f32 %v920_v50, %v872_v44  ;;  %v1021_v54 = vpop.f32.mrf.mxu1  ;;  %1293 = vmatmul.bf16.gmra.mxu3 %v1074_v49  ;;  %v973_v58 = vadd.f32 %v972_v52, %v2364_v48 }
 0x1cb   : > { %v1053_v56 = vmax.f32 %v921_v53, 0.0  ;;  %v1022_v62 = vadd.f32 %v1021_v54, %v973_v58 }
 0x1cd   : > { %v1073_v57 = vpack.c.bf16 %v1053_v56, %v1051_v55  ;;  %v1056_v3 = vmax.f32 %v1022_v62, 0.0 }
 0x1ce   : > { %v874_v59 = vpop.f32.mrf.mxu2 }
 0x1cf   : > { %v923_v60 = vpop.f32.mrf.mxu3  ;;  %1244 = vmatmul.bf16.gmra.mxu2 %v1073_v57  ;;  %v875_v1 = vadd.f32 %v874_v59, %v2367_v51 }
 0x1d0   : > { %v974_v61 = vpop.f32.mrf.mxu0 }
 0x1d1   : > { %v975_v63 = vadd.f32 %v974_v61, %v2364_v48  ;;  %v1023_v0 = vpop.f32.mrf.mxu1  ;;  %v924_v6 = vadd.f32 %v923_v60, %v875_v1 }
 0x1d3   : > { %v1024_v2 = vadd.f32 %v1023_v0, %v975_v63  ;;  %v1055_v13 = vmax.f32 %v924_v6, 0.0 }
 0x1d5   : > { %v1058_v4 = vmax.f32 %v1024_v2, 0.0 }
 0x1d6   : > { %v876_v5 = vpop.f32.mrf.mxu2 }
 0x1d7   : > { %v1076_v7 = vpack.c.bf16 %v1058_v4, %v1056_v3  ;;  %v877_v8 = vadd.f32 %v876_v5, %v2367_v51  ;;  %v925_v9 = vpop.f32.mrf.mxu3 }
 0x1d8   : > { %v977_v10 = vpop.f32.mrf.mxu0 }
 0x1d9   : > { %v926_v11 = vadd.f32 %v925_v9, %v877_v8  ;;  %v1026_v12 = vpop.f32.mrf.mxu1  ;;  %1298 = vmatmul.bf16.gmra.mxu3 %v1076_v7  ;;  %v978_v16 = vadd.f32 %v977_v10, %v2364_v48 }
 0x1db   : > { %v1057_v14 = vmax.f32 %v926_v11, 0.0  ;;  %v1027_v20 = vadd.f32 %v1026_v12, %v978_v16 }
 0x1dd   : > { %v1075_v15 = vpack.c.bf16 %v1057_v14, %v1055_v13  ;;  %v1060_v25 = vmax.f32 %v1027_v20, 0.0 }
 0x1de   : > { %v879_v17 = vpop.f32.mrf.mxu2 }
 0x1df   : > { %v928_v18 = vpop.f32.mrf.mxu3  ;;  %1249 = vmatmul.bf16.gmra.mxu2 %v1075_v15  ;;  %v880_v23 = vadd.f32 %v879_v17, %v2367_v51 }
 0x1e0   : > { %v979_v19 = vpop.f32.mrf.mxu0 }
 0x1e1   : > { %v980_v21 = vadd.f32 %v979_v19, %v2364_v48  ;;  %v1028_v22 = vpop.f32.mrf.mxu1  ;;  %v929_v28 = vadd.f32 %v928_v18, %v880_v23 }
 0x1e3   : > { %v1029_v24 = vadd.f32 %v1028_v22, %v980_v21  ;;  %v1059_v33 = vmax.f32 %v929_v28, 0.0 }
 0x1e5   : > { %v1062_v26 = vmax.f32 %v1029_v24, 0.0 }
 0x1e6   : > { %v881_v27 = vpop.f32.mrf.mxu2 }
 0x1e7   : > { %v1078_v29 = vpack.c.bf16 %v1062_v26, %v1060_v25  ;;  %v882_v30 = vadd.f32 %v881_v27, %v2367_v51  ;;  %v930_v31 = vpop.f32.mrf.mxu3 }
 0x1e9   : > { %v931_v32 = vadd.f32 %v930_v31, %v882_v30  ;;  %1303 = vmatmul.bf16.gmra.mxu3 %v1078_v29 }
 0x1eb   : > { %v1061_v34 = vmax.f32 %v931_v32, 0.0 }
 0x1ed   : > { %v1077_v35 = vpack.c.bf16 %v1061_v34, %v1059_v33 }
 0x1ef   : > { %1254 = vmatmul.bf16.gmra.mxu2 %v1077_v35 }
 0x1fc   : > { %v1269_v48 = vpop.f32.mrf.mxu3 }
 0x202   : > { %v1220_v37 = vpop.f32.mrf.mxu2 }
 0x203   : > { %v1221_v38 = vadd.f32 %v2403_v36, %v1220_v37 }
 0x204   : > { %v1271_v39 = vpop.f32.mrf.mxu3 }
 0x205   : > { %v1270_v40 = vadd.f32 %v1269_v48, %v1221_v38 }
 0x207   : > { %1309 = vst [vmem:[%s2408_s29] sm:$0xff] %v1270_v40 }
 0x20a   : > { %v1222_v51 = vpop.f32.mrf.mxu2 }
 0x20b   : > { %v1223_v41 = vadd.f32 %v2403_v36, %v1222_v51 }
 0x20c   : > { %v1274_v42 = vpop.f32.mrf.mxu3 }
 0x20d   : > { %v1272_v45 = vadd.f32 %v1271_v39, %v1223_v41 }
 0x20f   : > { %1310 = vst [vmem:[%s2408_s29 + $0x8] sm:$0xff] %v1272_v45 }
 0x212   : > { %v1225_v46 = vpop.f32.mrf.mxu2 }
 0x213   : > { %v1226_v43 = vadd.f32 %v2403_v36, %v1225_v46 }
 0x214   : > { %v1276_v47 = vpop.f32.mrf.mxu3 }
 0x215   : > { %v1275_v49 = vadd.f32 %v1274_v42, %v1226_v43 }
 0x217   : > { %1311 = vst [vmem:[%s2408_s29 + $0x10] sm:$0xff] %v1275_v49 }
 0x21a   : > { %v1227_v44 = vpop.f32.mrf.mxu2 }
 0x21b   : > { %v1228_v50 = vadd.f32 %v2403_v36, %v1227_v44 }
 0x21c   : > { %v1279_v52 = vpop.f32.mrf.mxu3 }
 0x21d   : > { %v1277_v53 = vadd.f32 %v1276_v47, %v1228_v50 }
 0x21f   : > { %1312 = vst [vmem:[%s2408_s29 + $0x18] sm:$0xff] %v1277_v53 }
 0x222   : > { %v1230_v54 = vpop.f32.mrf.mxu2 }
 0x223   : > { %v1231_v55 = vadd.f32 %v2403_v36, %v1230_v54 }
 0x224   : > { %v1281_v56 = vpop.f32.mrf.mxu3 }
 0x225   : > { %v1280_v57 = vadd.f32 %v1279_v52, %v1231_v55 }
 0x227   : > { %1313 = vst [vmem:[%s2408_s29 + $0x20] sm:$0xff] %v1280_v57 }
 0x22a   : > { %v1232_v58 = vpop.f32.mrf.mxu2 }
 0x22b   : > { %v1233_v59 = vadd.f32 %v2403_v36, %v1232_v58 }
 0x22c   : > { %v1284_v60 = vpop.f32.mrf.mxu3 }
 0x22d   : > { %v1282_v61 = vadd.f32 %v1281_v56, %v1233_v59 }
 0x22f   : > { %1314 = vst [vmem:[%s2408_s29 + $0x28] sm:$0xff] %v1282_v61 }
 0x232   : > { %v1235_v62 = vpop.f32.mrf.mxu2 }
 0x233   : > { %v1236_v63 = vadd.f32 %v2403_v36, %v1235_v62 }
 0x234   : > { %v1286_v0 = vpop.f32.mrf.mxu3 }
 0x235   : > { %v1285_v1 = vadd.f32 %v1284_v60, %v1236_v63 }
 0x237   : > { %1315 = vst [vmem:[%s2408_s29 + $0x30] sm:$0xff] %v1285_v1 }
 0x23a   : > { %v1237_v2 = vpop.f32.mrf.mxu2 }
 0x23b   : > { %v1238_v3 = vadd.f32 %v2403_v36, %v1237_v2 }
 0x23c   : > { %v1289_v4 = vpop.f32.mrf.mxu3 }
 0x23d   : > { %v1287_v5 = vadd.f32 %v1286_v0, %v1238_v3 }
 0x23f   : > { %1316 = vst [vmem:[%s2408_s29 + $0x38] sm:$0xff] %v1287_v5 }
 0x242   : > { %v1240_v6 = vpop.f32.mrf.mxu2 }
 0x243   : > { %v1241_v7 = vadd.f32 %v2403_v36, %v1240_v6 }
 0x244   : > { %v1291_v8 = vpop.f32.mrf.mxu3 }
 0x245   : > { %v1290_v9 = vadd.f32 %v1289_v4, %v1241_v7 }
 0x247   : > { %1317 = vst [vmem:[%s2408_s29 + $0x40] sm:$0xff] %v1290_v9 }
 0x24a   : > { %v1242_v10 = vpop.f32.mrf.mxu2 }
 0x24b   : > { %v1243_v11 = vadd.f32 %v2403_v36, %v1242_v10 }
 0x24c   : > { %v1294_v12 = vpop.f32.mrf.mxu3 }
 0x24d   : > { %v1292_v13 = vadd.f32 %v1291_v8, %v1243_v11 }
 0x24f   : > { %1318 = vst [vmem:[%s2408_s29 + $0x48] sm:$0xff] %v1292_v13 }
 0x252   : > { %v1245_v14 = vpop.f32.mrf.mxu2 }
 0x253   : > { %v1246_v15 = vadd.f32 %v2403_v36, %v1245_v14 }
 0x254   : > { %v1296_v16 = vpop.f32.mrf.mxu3 }
 0x255   : > { %v1295_v17 = vadd.f32 %v1294_v12, %v1246_v15 }
 0x257   : > { %1319 = vst [vmem:[%s2408_s29 + $0x50] sm:$0xff] %v1295_v17 }
 0x25a   : > { %v1247_v18 = vpop.f32.mrf.mxu2 }
 0x25b   : > { %v1248_v19 = vadd.f32 %v2403_v36, %v1247_v18 }
 0x25c   : > { %v1299_v21 = vpop.f32.mrf.mxu3 }
 0x25d   : > { %v1297_v20 = vadd.f32 %v1296_v16, %v1248_v19 }
 0x25f   : > { %1320 = vst [vmem:[%s2408_s29 + $0x58] sm:$0xff] %v1297_v20 }
 0x262   : > { %v1250_v22 = vpop.f32.mrf.mxu2 }
 0x263   : > { %v1251_v23 = vadd.f32 %v2403_v36, %v1250_v22 }
 0x264   : > { %v1301_v25 = vpop.f32.mrf.mxu3 }
 0x265   : > { %v1300_v24 = vadd.f32 %v1299_v21, %v1251_v23 }
 0x267   : > { %1321 = vst [vmem:[%s2408_s29 + $0x60] sm:$0xff] %v1300_v24 }
 0x26a   : > { %v1252_v26 = vpop.f32.mrf.mxu2 }
 0x26b   : > { %v1253_v27 = vadd.f32 %v2403_v36, %v1252_v26 }
 0x26c   : > { %v1304_v29 = vpop.f32.mrf.mxu3 }
 0x26d   : > { %v1302_v28 = vadd.f32 %v1301_v25, %v1253_v27 }
 0x26f   : > { %1322 = vst [vmem:[%s2408_s29 + $0x68] sm:$0xff] %v1302_v28 }
 0x272   : > { %v1255_v30 = vpop.f32.mrf.mxu2 }
 0x273   : > { %v1256_v31 = vadd.f32 %v2403_v36, %v1255_v30 }
 0x274   : > { %v1306_v35 = vpop.f32.mrf.mxu3 }
 0x275   : > { %v1305_v32 = vadd.f32 %v1304_v29, %v1256_v31 }
 0x277   : > { %1323 = vst [vmem:[%s2408_s29 + $0x70] sm:$0xff] %v1305_v32 }
 0x27a   : > { %v1257_v33 = vpop.f32.mrf.mxu2 }
 0x27b   : > { %v1258_v34 = vadd.f32 %v2403_v36, %v1257_v33 }
 0x27d   : > { %v1307_v48 = vadd.f32 %v1306_v35, %v1258_v34 }
 0x27f   : > { %1324 = vst [vmem:[%s2408_s29 + $0x78] sm:$0xff] %v1307_v48 }
 0x280   : > { %2067 = shalt.err (!%p2064_p10)
}
 0x281   : > { %s2124_s11 = smov 128   ;;  %s2125_s29 = smov 8  }
 0x282   : > { %1814 = dma.vmem_to_hbm [thread:$0]  (%p2259_p5), %s1339_s14, 2048, %s1341_s21, %s1326_s1, %s2124_s11, %s2124_s11, %s2125_s29  }
 0x283 PF: > { %s1355_s10 = sand.u32 1, %s2102_s24   ;;  %p2495_p12 = scmp.ge.s32.totalorder %s2114_s27, 2 }
 0x284   : > { %s1356_s16 = scalar_lea.sflag [#allocation4], %s1355_s10 }
 0x285   : > { %p1834_p13 = pnand %p2495_p12, %p2201_p6 }
 0x287   : > { %p1835_p0 = pneg %p1834_p13 }
 0x289   : > { %2097 = dma.done.wait (%p1835_p0), %s1356_s16, 2048  }
 0x28a   : > { %2099 = vsyncadd (%p1835_p0), %s1356_s16, 4294965248  ;;  %p22_p3 = scmp.ge.s32.totalorder %s2246_s23, 4   ;;  %s2496_s24 = smov %s2106_s25 }
 0x28b   : > { %s2497_s25 = smov %s2110_s26  ;;  %s2498_s26 = smov %s2255_s13 }
 0x28c   : > { %s2499_s27 = smov %s2246_s23  ;;  %24 = sbr.rel (!%p22_p3) target bundleno = 9 (0x9), region = 109 }
 0x291   :  { %1362 = vsyncpa [#allocation3], 1 }
 0x292   :  { %1364 = vsyncpa [#allocation3 + $0x1], 1 }
 0x293   :  { %1365 = vsyncpa [#allocation6], 1 }
 0x294   :  { %1366 = vsyncpa [#allocation9], 1 }
 0x295   :  { %1367 = vsyncpa [#allocation4], 1 }
 0x296   :  { %1369 = vsyncpa [#allocation4 + $0x1], 1 }

// kernel: tpu_custom_call.1
= control target key start
LH: loop header
LB: loop body
LE: loop exit
PB: predicated region body
PF: predicated region fallthrough
CT: control target
= control target key end

     0   :  { %s2475_s0 = inlined_call_operand.hbm [shape: f32[256,128], index: 0, kind: input, shape index: {}]   ;;  %s2476_s1 = inlined_call_operand.hbm [shape: bf16[128,256], index: 1, kind: input, shape index: {}]   ;;  %s2477_s2 = inlined_call_operand.hbm [shape: f32[1,256], index: 2, kind: input, shape index: {}]   ;;  %s2478_s3 = inlined_call_operand.hbm [shape: bf16[256,256], index: 3, kind: input, shape index: {}]   ;;  %s2479_s4 = inlined_call_operand.vmem [shape: f32[1,256], index: 4, kind: input, shape index: {}]   ;;  %s2480_s5 = inlined_call_operand.hbm [shape: bf16[256,128], index: 5, kind: input, shape index: {}]   ;;  %s2481_s6 = inlined_call_operand.vmem [shape: f32[1,128], index: 6, kind: input, shape index: {}]   ;;  %s2482_s7 = inlined_call_operand.hbm [shape: f32[256,128], index: 7, kind: output, shape index: {}]  }
   0x1   :  { %2485 = sst [smem:[#allocation16_spill]] %s2476_s1 }
   0x2   :  { %12 = vsyncpa [#allocation3], 0 }
   0x3   :  { %14 = vsyncpa [#allocation3 + $0x1], 0 }
   0x4   :  { %15 = vsyncpa [#allocation6], 0 }
   0x5   :  { %16 = vsyncpa [#allocation9], 0 }
   0x6   :  { %17 = vsyncpa [#allocation4], 0 }
   0x7   :  { %19 = vsyncpa [#allocation4 + $0x1], 0  ;;  %s2166_s24 = smov 0   ;;  %s2168_s25 = smov 0  }
   0x8   :  { %s2170_s26 = smov 0   ;;  %s2172_s27 = smov 0  }
   0x9 LB: > { %s2187_s28 = sadd.s32 4294967295, %s2114_s27   ;;  %s1452_s29 = sadd.s32 4294967294, %s2114_s27   ;;  %s2114_s27 = sphi %s2172_s27, %s2499_s27   ;;  %s2110_s26 = sphi %s2170_s26, %s2498_s26   ;;  %s2106_s25 = sphi %s2168_s25, %s2497_s25   ;;  %s2102_s24 = sphi %s2166_s24, %s2496_s24  }
   0xa   : > { %p45_p0 = scmp.ne.s32.totalorder %s2106_s25, %s2102_s24  ;;  %p46_p1 = scmp.eq.s32.totalorder %s2187_s28, 0 }
   0xb   : > { %p195_p2 = scmp.eq.s32.totalorder %s2187_s28, 1  ;;  %p201_p3 = scmp.eq.s32.totalorder %s1452_s29, 1 }
   0xc   : > { %p2196_p4 = por %p46_p1, %p45_p0  ;;  %p1453_p5 = scmp.ge.s32.totalorder %s2114_s27, 1 }
   0xd   : > { %p2201_p6 = por %p201_p3, %p45_p0  ;;  %p208_p7 = scmp.lt.s32.totalorder %s2114_s27, 3 }
   0xe   : > { %s2488_s1 = sld [smem:[#allocation16_spill]]  ;;  %s2116_s13 = smov [#allocation5]  }
   0xf   : > { %p2209_p8 = pnand %p1453_p5, %p208_p7  ;;  %s221_s14 = sshll.u32 %s2116_s13, 4  ;;  %s222_s14 = int_to_ptr.vmem [resolvable:$true] %s221_s14 }
  0x10   : > { %s245_s18 = sshll.u32 %s2478_s3, 4  ;;  %s2483_s19 = smov 128   ;;  %s246_s18 = int_to_ptr.hbm [resolvable:$true] %s245_s18 }
  0x11   : > { %p1816_p9 = pneg %p2209_p8  ;;  %s2484_s20 = smov 8  }
  0x12   : > { %s2119_s21 = smov [#allocation8]   ;;  %s234_s9 = sshll.u32 %s2477_s2, 4  ;;  %s235_s9 = int_to_ptr.hbm [resolvable:$true] %s234_s9 }
  0x13   : > { %p2217_p10 = pnand %p1816_p9, %p46_p1  ;;  %s247_s22 = sshll.u32 %s2119_s21, 4  ;;  %s248_s22 = int_to_ptr.vmem [resolvable:$true] %s247_s22 }
  0x14   : > { %s219_s11 = sshll.u32 %s2488_s1, 4  ;;  %s2121_s17 = smov [#allocation10]   ;;  %s220_s11 = int_to_ptr.hbm [resolvable:$true] %s219_s11 }
  0x15   : > { %1819 = dma.hbm_to_vmem [thread:$0]  (!%p2217_p10), %s220_s11, 2048, %s222_s14, [#allocation6], %s2483_s19, %s2483_s19, %s2484_s20  }
  0x16   : > { %1825 = dma.hbm_to_vmem [thread:$0]  (!%p2217_p10), %s246_s18, 4096, %s248_s22, [#allocation9], %s2483_s19, %s2483_s19, %s2484_s20  }
  0x17   : > { %s262_s11 = sshll.u32 %s2480_s5, 4  ;;  %s2120_s14 = smov [#allocation7]   ;;  %s263_s11 = int_to_ptr.hbm [resolvable:$true] %s262_s11 }
  0x18   : > { %s236_s16 = sshll.u32 %s2120_s14, 4  ;;  %s264_s18 = sshll.u32 %s2121_s17, 4  ;;  %s237_s16 = int_to_ptr.vmem [resolvable:$true] %s236_s16  ;;  %s265_s18 = int_to_ptr.vmem [resolvable:$true] %s264_s18 }
  0x19   : > { %1822 = dma.hbm_to_vmem [thread:$0]  (!%p2217_p10), %s235_s9, 32, %s237_s16, [#allocation6]  }
  0x1a   : > { %s2122_s21 = smov 64   ;;  %s2123_s22 = smov 4  }
  0x1b   : > { %1828 = dma.hbm_to_vmem [thread:$0]  (!%p2217_p10), %s263_s11, 2048, %s265_s18, [#allocation9], %s2122_s21, %s2122_s21, %s2123_s22  }
  0x1c   : > { %s2246_s23 = sadd.s32 1, %s2114_s27   ;;  %s32_s10 = sadd.s32 1, %s2110_s26 }
  0x1d   : > { %s29_s29 = ssub.s32 %s2114_s27, %s2246_s23  ;;  %p39_p13 = scmp.ne.s32.totalorder %s2110_s26, %s2106_s25 }
  0x1e   : > { %p30_p12 = scmp.eq.s32.totalorder %s29_s29, 0  ;;  %p40_p0 = scmp.eq.s32.totalorder %s2114_s27, 0 }
  0x1f   : > { %p2259_p5 = por %p195_p2, %p39_p13  ;;  %p1841_p7 = scmp.lt.s32.totalorder %s2114_s27, 2 }
  0x20   : > { %s2255_s13 = scalar_select %p30_p12, %s2110_s26, %s32_s10  }
  0x21   : > { %p41_p3 = por %p40_p0, %p39_p13  ;;  %s281_s14 = sand.u32 1, %s2110_s26  }
  0x22   : > { %s1459_s15 = sshll.u32 %s281_s14, 7  ;;  %s1730_s11 = sshll.u32 %s2114_s27, 7 }
  0x23   : > { %s290_s18 = scalar_lea.hbm %s2475_s0, %s1730_s11  ;;  %s285_s21 = scalar_lea.vmem [#allocation2], %s1459_s15 }
  0x24   : > { %s293_s22 = sshll.u32 %s285_s21, 4  ;;  %s291_s29 = sshll.u32 %s290_s18, 4  ;;  %s294_s22 = int_to_ptr.vmem [resolvable:$true] %s293_s22  ;;  %s292_s29 = int_to_ptr.hbm [resolvable:$true] %s291_s29 }
  0x25   : > { %p2269_p9 = pnand %p1841_p7, %p41_p3  ;;  %s282_s19 = scalar_lea.sflag [#allocation3], %s281_s14 }
  0x26   : > { %s2010_s20 = sshra.s32 %s292_s29, 4  ;;  %s2017_s16 = scalar_lea.hbm %s2475_s0, 256  ;;  %s2011_s20 = int_to_ptr.hbm [resolvable:$true] %s2010_s20 }
  0x27   : > { %s2012_s1 = scalar_lea.hbm %s2011_s20, 128  ;;  %p2014_p10 = pneg %p2269_p9 }
  0x28   : > { %p2013_p2 = scmp.ne.s32.totalorder %s2011_s20, %s2012_s1  ;;  %p2018_p0 = scmp.lt.s32.totalorder %s2011_s20, %s2475_s0 }
  0x29   : > { %p2019_p3 = scmp.lt.s32.totalorder %s2017_s16, %s2012_s1 }
  0x2a   : > { %p2015_p12 = pnand %p2014_p10, %p2013_p2 }
  0x2b   : > { %p2020_p7 = por %p2019_p3, %p2018_p0 }
  0x2c   : > { %p2016_p13 = pneg %p2015_p12 }
  0x2e   : > { %p2021_p11 = pnand %p2020_p7, %p2016_p13 }
  0x30   : > { %2024 = shalt.err (!%p2021_p11)
}
  0x31   : > { %s2493_s14 = smov 8   ;;  %s2494_s21 = smov 128  }
  0x32   : > { %1832 = dma.hbm_to_vmem [thread:$0]  (!%p2269_p9), %s292_s29, 2048, %s294_s22, %s282_s19, %s2494_s21, %s2494_s21, %s2493_s14  }
  0x33   : > { %305 = sbr.rel (%p2209_p8) target bundleno = 643 (0x283), region = 48  ;;  %s2289_s11 = sand.u32 (!%p2209_p8), 1, %s2106_s25  }
  0x34   : > { %s1463_s1 = sshll.u32 (!%p2209_p8), %s2289_s11, 7  ;;  %s308_s20 = scalar_lea.sflag (!%p2209_p8), [#allocation3], %s2289_s11 }
  0x35   : > { %s2295_s15 = scalar_lea.vmem (!%p2209_p8), [#allocation2], %s1463_s1 }
  0x38   : > { %2085 = dma.done.wait (%p2196_p4), %s308_s20, 2048  }
  0x39   : > { %2087 = vsyncadd (%p2196_p4), %s308_s20, 4294965248 }
  0x3a   : > { %2089 = dma.done.wait (%p46_p1), [#allocation6], 2080  }
  0x3b   : > { %2091 = vsyncadd (%p46_p1), [#allocation6], 4294965216 }
  0x3c   : > { %2093 = dma.done.wait (%p46_p1), [#allocation9], 6144  }
  0x3d   : > { %2095 = vsyncadd (%p46_p1), [#allocation9], 4294961152  ;;  %v1527_v0 = vld [vmem:[#allocation5 + $0x70] sm:$0xf]  ;;  %v1746_v1 = vld [vmem:[#allocation5 + $0x74] sm:$0xf0] }
  0x3e   : > { %v1745_v2 = vld [vmem:[#allocation5 + $0x74] sm:$0xf]  ;;  %v1528_v3 = vor.u32 %v1746_v1, %v1527_v0  ;;  %v1529_v4 = vld [vmem:[#allocation5 + $0x78] sm:$0xf0]  ;;  %v1519_v5 = vld [vmem:[#allocation5 + $0x60] sm:$0xf] }
  0x3f   : > { %v1744_v6 = vld [vmem:[#allocation5 + $0x64] sm:$0xf0]  ;;  %v1532_v7 = vor.u32 %v1745_v2, %v1529_v4  ;;  %v1743_v8 = vld [vmem:[#allocation5 + $0x64] sm:$0xf]  ;;  %v1521_v9 = vld [vmem:[#allocation5 + $0x68] sm:$0xf0] }
  0x40   : > { %491 = vmatpush.bf16.msra.mxu0 %v1528_v3  ;;  %v1520_v10 = vor.u32 %v1744_v6, %v1519_v5  ;;  %v1524_v11 = vor.u32 %v1743_v8, %v1521_v9  ;;  %v1511_v12 = vld [vmem:[#allocation5 + $0x50] sm:$0xf]  ;;  %v1742_v13 = vld [vmem:[#allocation5 + $0x54] sm:$0xf0]  ;;  %v1741_v14 = vld [vmem:[#allocation5 + $0x54] sm:$0xf] }
  0x41   : > { %540 = vmatpush.bf16.msra.mxu1 %v1532_v7  ;;  %v1513_v15 = vld [vmem:[#allocation5 + $0x58] sm:$0xf0]  ;;  %v1512_v16 = vor.u32 %v1742_v13, %v1511_v12  ;;  %v1503_v18 = vld [vmem:[#allocation5 + $0x40] sm:$0xf]  ;;  %v1740_v19 = vld [vmem:[#allocation5 + $0x44] sm:$0xf0] }
  0x42   : > { %v1516_v17 = vor.u32 %v1741_v14, %v1513_v15  ;;  %v1739_v20 = vld [vmem:[#allocation5 + $0x44] sm:$0xf]  ;;  %v1505_v21 = vld [vmem:[#allocation5 + $0x48] sm:$0xf0]  ;;  %v1504_v22 = vor.u32 %v1740_v19, %v1503_v18  ;;  %v1495_v24 = vld [vmem:[#allocation5 + $0x30] sm:$0xf] }
  0x43   : > { %v1508_v23 = vor.u32 %v1739_v20, %v1505_v21  ;;  %v1738_v25 = vld [vmem:[#allocation5 + $0x34] sm:$0xf0]  ;;  %v1737_v26 = vld [vmem:[#allocation5 + $0x34] sm:$0xf]  ;;  %v1497_v27 = vld [vmem:[#allocation5 + $0x38] sm:$0xf0] }
  0x44   : > { %492 = vmatpush.bf16.msra.mxu0 %v1520_v10  ;;  %v1496_v28 = vor.u32 %v1738_v25, %v1495_v24  ;;  %v1500_v29 = vor.u32 %v1737_v26, %v1497_v27  ;;  %v1487_v30 = vld [vmem:[#allocation5 + $0x20] sm:$0xf]  ;;  %v1736_v31 = vld [vmem:[#allocation5 + $0x24] sm:$0xf0]  ;;  %v1735_v32 = vld [vmem:[#allocation5 + $0x24] sm:$0xf] }
  0x45   : > { %541 = vmatpush.bf16.msra.mxu1 %v1524_v11  ;;  %v1489_v33 = vld [vmem:[#allocation5 + $0x28] sm:$0xf0]  ;;  %v1488_v34 = vor.u32 %v1736_v31, %v1487_v30  ;;  %v1479_v36 = vld [vmem:[#allocation5 + $0x10] sm:$0xf]  ;;  %v1734_v37 = vld [vmem:[#allocation5 + $0x14] sm:$0xf0] }
  0x46   : > { %v1492_v35 = vor.u32 %v1735_v32, %v1489_v33  ;;  %v1733_v38 = vld [vmem:[#allocation5 + $0x14] sm:$0xf]  ;;  %v1481_v39 = vld [vmem:[#allocation5 + $0x18] sm:$0xf0]  ;;  %v1480_v40 = vor.u32 %v1734_v37, %v1479_v36  ;;  %v1471_v42 = vld [vmem:[#allocation5] sm:$0xf] }
  0x47   : > { %v1484_v41 = vor.u32 %v1733_v38, %v1481_v39  ;;  %v1732_v43 = vld [vmem:[#allocation5 + $0x4] sm:$0xf0]  ;;  %v1731_v44 = vld [vmem:[#allocation5 + $0x4] sm:$0xf]  ;;  %v1473_v45 = vld [vmem:[#allocation5 + $0x8] sm:$0xf0] }
  0x48   : > { %493 = vmatpush.bf16.msra.mxu0 %v1512_v16  ;;  %v1761_v46 = vld [vmem:[#allocation8 + $0x74] sm:$0xf]  ;;  %v1593_v47 = vld [vmem:[#allocation8 + $0x78] sm:$0xf0]  ;;  %v1472_v50 = vor.u32 %v1732_v43, %v1471_v42  ;;  %v366_v52 = vld [vmem:[%s2295_s15 + $0x8] sm:$0xff]  ;;  %v1476_v53 = vor.u32 %v1731_v44, %v1473_v45  ;;  %s2408_s29 = scalar_lea.vmem [#allocation11], %s1463_s1 }
  0x49   : > { %542 = vmatpush.bf16.msra.mxu1 %v1516_v17  ;;  %v1777_v48 = vld [vmem:[#allocation8 + $0xf4] sm:$0xf]  ;;  %v1657_v49 = vld [vmem:[#allocation8 + $0xf8] sm:$0xf0]  ;;  %v1596_v54 = vor.u32 %v1761_v46, %v1593_v47  ;;  %v1759_v57 = vld [vmem:[#allocation8 + $0x64] sm:$0xf] }
  0x4a   : > { %v365_v51 = vld [vmem:[%s2295_s15] sm:$0xff]  ;;  %v1660_v55 = vor.u32 %v1777_v48, %v1657_v49  ;;  %v1585_v58 = vld [vmem:[#allocation8 + $0x68] sm:$0xf0]  ;;  %v368_v0 = vld [vmem:[%s2295_s15 + $0x18] sm:$0xff]  ;;  %s1795_s10 = sshll.u32 %s2187_s28, 7  ;;  %s1338_s14 = sshll.u32 %s2408_s29, 4  ;;  %s1339_s14 = int_to_ptr.vmem [resolvable:$true] %s1338_s14 }
  0x4b   : > { %v381_v56 = vpack.c.bf16 %v366_v52, %v365_v51  ;;  %v1775_v59 = vld [vmem:[#allocation8 + $0xe4] sm:$0xf]  ;;  %v1588_v60 = vor.u32 %v1759_v57, %v1585_v58  ;;  %v1649_v61 = vld [vmem:[#allocation8 + $0xe8] sm:$0xf0]  ;;  %v1757_v2 = vld [vmem:[#allocation8 + $0x54] sm:$0xf]  ;;  %s1337_s18 = scalar_lea.hbm %s2482_s7, %s1795_s10 }
  0x4c   : > { %494 = vmatpush.bf16.msra.mxu0 %v1504_v22  ;;  %v1652_v62 = vor.u32 %v1775_v59, %v1649_v61  ;;  %v367_v63 = vld [vmem:[%s2295_s15 + $0x10] sm:$0xff]  ;;  %v1577_v3 = vld [vmem:[#allocation8 + $0x58] sm:$0xf0]  ;;  %v370_v9 = vld [vmem:[%s2295_s15 + $0x28] sm:$0xff]  ;;  %s1340_s21 = sshll.u32 %s1337_s18, 4  ;;  %s1326_s1 = scalar_lea.sflag [#allocation4], %s2289_s11  ;;  %s1341_s21 = int_to_ptr.hbm [resolvable:$true] %s1340_s21 }
  0x4d   : > { %543 = vmatpush.bf16.msra.mxu1 %v1508_v23  ;;  %v382_v1 = vpack.c.bf16 %v368_v0, %v367_v63  ;;  %v1773_v4 = vld [vmem:[#allocation8 + $0xd4] sm:$0xf]  ;;  %v1580_v5 = vor.u32 %v1757_v2, %v1577_v3  ;;  %v1641_v6 = vld [vmem:[#allocation8 + $0xd8] sm:$0xf0]  ;;  %v1755_v11 = vld [vmem:[#allocation8 + $0x44] sm:$0xf] }
  0x4e   : > { %v1644_v7 = vor.u32 %v1773_v4, %v1641_v6  ;;  %v369_v8 = vld [vmem:[%s2295_s15 + $0x20] sm:$0xff]  ;;  %v1569_v12 = vld [vmem:[#allocation8 + $0x48] sm:$0xf0]  ;;  %v372_v18 = vld [vmem:[%s2295_s15 + $0x38] sm:$0xff]  ;;  %s2054_s20 = sshra.s32 %s1341_s21, 4  ;;  %s2060_s12 = scalar_lea.hbm %s2482_s7, 256  ;;  %s2055_s20 = int_to_ptr.hbm [resolvable:$true] %s2054_s20 }
  0x4f   : > { %v383_v10 = vpack.c.bf16 %v370_v9, %v369_v8  ;;  %v1771_v13 = vld [vmem:[#allocation8 + $0xc4] sm:$0xf]  ;;  %v1572_v14 = vor.u32 %v1755_v11, %v1569_v12  ;;  %v1633_v15 = vld [vmem:[#allocation8 + $0xc8] sm:$0xf0]  ;;  %v1753_v20 = vld [vmem:[#allocation8 + $0x34] sm:$0xf]  ;;  %p2061_p11 = scmp.lt.s32.totalorder %s2055_s20, %s2482_s7 }
  0x50   : > { %495 = vmatpush.bf16.msra.mxu0 %v1496_v28  ;;  %v1636_v16 = vor.u32 %v1771_v13, %v1633_v15  ;;  %v371_v17 = vld [vmem:[%s2295_s15 + $0x30] sm:$0xff]  ;;  %v1561_v21 = vld [vmem:[#allocation8 + $0x38] sm:$0xf0]  ;;  %v374_v27 = vld [vmem:[%s2295_s15 + $0x48] sm:$0xff]  ;;  %s2056_s28 = scalar_lea.hbm %s2055_s20, 128 }
  0x51   : > { %544 = vmatpush.bf16.msra.mxu1 %v1500_v29  ;;  %v384_v19 = vpack.c.bf16 %v372_v18, %v371_v17  ;;  %v1769_v22 = vld [vmem:[#allocation8 + $0xb4] sm:$0xf]  ;;  %v1564_v23 = vor.u32 %v1753_v20, %v1561_v21  ;;  %v1625_v24 = vld [vmem:[#allocation8 + $0xb8] sm:$0xf0]  ;;  %v1751_v29 = vld [vmem:[#allocation8 + $0x24] sm:$0xf]  ;;  %p2057_p1 = scmp.ne.s32.totalorder %s2055_s20, %s2056_s28  ;;  %p2062_p9 = scmp.lt.s32.totalorder %s2060_s12, %s2056_s28 }
  0x52   : > { %v1628_v25 = vor.u32 %v1769_v22, %v1625_v24  ;;  %v373_v26 = vld [vmem:[%s2295_s15 + $0x40] sm:$0xff]  ;;  %v1553_v30 = vld [vmem:[#allocation8 + $0x28] sm:$0xf0]  ;;  %v1655_v38 = vld [vmem:[#allocation8 + $0xf0] sm:$0xf] }
  0x53   : > { %v385_v28 = vpack.c.bf16 %v374_v27, %v373_v26  ;;  %v1767_v31 = vld [vmem:[#allocation8 + $0xa4] sm:$0xf]  ;;  %v1556_v32 = vor.u32 %v1751_v29, %v1553_v30  ;;  %v1617_v33 = vld [vmem:[#allocation8 + $0xa8] sm:$0xf0]  ;;  %v1778_v39 = vld [vmem:[#allocation8 + $0xf4] sm:$0xf0]  ;;  %p2058_p4 = pnand %p2057_p1, %p2259_p5  ;;  %p2063_p2 = por %p2062_p9, %p2061_p11 }
  0x54   : > { %496 = vmatpush.bf16.msra.mxu0 %v1488_v34  ;;  %v1591_v34 = vld [vmem:[#allocation8 + $0x70] sm:$0xf]  ;;  %v1620_v36 = vor.u32 %v1767_v31, %v1617_v33  ;;  %v376_v42 = vld [vmem:[%s2295_s15 + $0x58] sm:$0xff]  ;;  %v1583_v44 = vld [vmem:[#allocation8 + $0x60] sm:$0xf] }
  0x55   : > { %545 = vmatpush.bf16.msra.mxu1 %v1492_v35  ;;  %v1762_v35 = vld [vmem:[#allocation8 + $0x74] sm:$0xf0]  ;;  %v1760_v45 = vld [vmem:[#allocation8 + $0x64] sm:$0xf0]  ;;  %v1647_v46 = vld [vmem:[#allocation8 + $0xe0] sm:$0xf]  ;;  %p2059_p8 = pneg %p2058_p4 }
  0x56   : > { %v1592_v37 = vor.u32 %v1762_v35, %v1591_v34  ;;  %v1584_v47 = vor.u32 %v1760_v45, %v1583_v44  ;;  %v1776_v48 = vld [vmem:[#allocation8 + $0xe4] sm:$0xf0]  ;;  %v1545_v51 = vld [vmem:[#allocation8 + $0x18] sm:$0xf0]  ;;  %v1575_v52 = vld [vmem:[#allocation8 + $0x50] sm:$0xf] }
  0x57   : > { %v1648_v49 = vor.u32 %v1776_v48, %v1647_v46  ;;  %v1765_v59 = vld [vmem:[#allocation8 + $0x94] sm:$0xf]  ;;  %v1567_v61 = vld [vmem:[#allocation8 + $0x40] sm:$0xf]  ;;  %v1756_v63 = vld [vmem:[#allocation8 + $0x44] sm:$0xf0]  ;;  %p2064_p10 = pnand %p2063_p2, %p2059_p8 }
  0x58   : > { %497 = vmatpush.bf16.msra.mxu0 %v1480_v40  ;;  %v1656_v40 = vor.u32 %v1778_v39, %v1655_v38  ;;  %835 = vmatpush.bf16.msra.mxu2 %v1592_v37  ;;  %v1631_v0 = vld [vmem:[#allocation8 + $0xc0] sm:$0xf]  ;;  %v1568_v2 = vor.u32 %v1756_v63, %v1567_v61  ;;  %v1559_v6 = vld [vmem:[#allocation8 + $0x30] sm:$0xf]  ;;  %v1770_v11 = vld [vmem:[#allocation8 + $0xb4] sm:$0xf0] }
  0x59   : > { %546 = vmatpush.bf16.msra.mxu1 %v1484_v41  ;;  %v375_v41 = vld [vmem:[%s2295_s15 + $0x50] sm:$0xff]  ;;  %v377_v4 = vld [vmem:[%s2295_s15 + $0x60] sm:$0xff]  ;;  %v1768_v17 = vld [vmem:[#allocation8 + $0xa4] sm:$0xf0] }
  0x5a   : > { %884 = vmatpush.bf16.msra.mxu3 %v1656_v40  ;;  %v386_v43 = vpack.c.bf16 %v376_v42, %v375_v41  ;;  %v1623_v8 = vld [vmem:[#allocation8 + $0xb0] sm:$0xf]  ;;  %v1551_v13 = vld [vmem:[#allocation8 + $0x20] sm:$0xf]  ;;  %v1537_v20 = vld [vmem:[#allocation8 + $0x8] sm:$0xf0] }
  0x5b   : > { %v1624_v12 = vor.u32 %v1770_v11, %v1623_v8  ;;  %v1543_v22 = vld [vmem:[#allocation8 + $0x10] sm:$0xf]  ;;  %v1766_v26 = vld [vmem:[#allocation8 + $0x94] sm:$0xf0]  ;;  %v1601_v29 = vld [vmem:[#allocation8 + $0x88] sm:$0xf0] }
  0x5c   : > { %498 = vmatpush.bf16.msra.mxu0 %v1472_v50  ;;  %v1749_v50 = vld [vmem:[#allocation8 + $0x14] sm:$0xf]  ;;  %836 = vmatpush.bf16.msra.mxu2 %v1584_v47  ;;  %v1607_v24 = vld [vmem:[#allocation8 + $0x90] sm:$0xf]  ;;  %v1535_v30 = vld [vmem:[#allocation8] sm:$0xf] }
  0x5d   : > { %547 = vmatpush.bf16.msra.mxu1 %v1476_v53  ;;  %v1548_v53 = vor.u32 %v1749_v50, %v1545_v51  ;;  %v1608_v27 = vor.u32 %v1766_v26, %v1607_v24  ;;  %v1599_v33 = vld [vmem:[#allocation8 + $0x80] sm:$0xf]  ;;  %v1764_v34 = vld [vmem:[#allocation8 + $0x84] sm:$0xf0]  ;;  %v379_v35 = vld [vmem:[%s2295_s15 + $0x70] sm:$0xff] }
  0x5e   : > { %885 = vmatpush.bf16.msra.mxu3 %v1648_v49  ;;  %v1600_v38 = vor.u32 %v1764_v34, %v1599_v33  ;;  %v405_v40 = vld [vmem:[#allocation7] sm:$0x3]  ;;  %v1785_v61 = vld [vmem:[#allocation10 + $0x30] sm:$0xff] }
  0x5f   : > { %499 = vmatmul.bf16.vlgmr.msra.gmra.mxu0 %v381_v56  ;;  %v2327_v44 = vperm.slane %v405_v40, 1  ;;  %v1786_v45 = vld [vmem:[#allocation10 + $0x38] sm:$0xff] }
  0x60   : > { %933 = vmatpush.bf16.msrb.mxu0 %v1596_v54  ;;  %548 = vmatmul.bf16.vlgmr.msra.gmra.mxu1 %v381_v56  ;;  %v1758_v54 = vld [vmem:[#allocation8 + $0x54] sm:$0xf0] }
  0x61   : > { %982 = vmatpush.bf16.msrb.mxu1 %v1660_v55  ;;  %v1639_v55 = vld [vmem:[#allocation8 + $0xd0] sm:$0xf]  ;;  %v1774_v56 = vld [vmem:[#allocation8 + $0xd4] sm:$0xf0]  ;;  %v1576_v57 = vor.u32 %v1758_v54, %v1575_v52 }
  0x62   : > { %v1640_v58 = vor.u32 %v1774_v56, %v1639_v55  ;;  %v1794_v46 = vld [vmem:[#allocation10 + $0x78] sm:$0xff] }
  0x63   : > { %837 = vmatpush.bf16.msra.mxu2 %v1576_v57 }
  0x64   : > { %934 = vmatpush.bf16.msrb.mxu0 %v1588_v60  ;;  %v1609_v60 = vld [vmem:[#allocation8 + $0x98] sm:$0xf0]  ;;  %886 = vmatpush.bf16.msra.mxu3 %v1640_v58 }
  0x65   : > { %983 = vmatpush.bf16.msrb.mxu1 %v1652_v62  ;;  %v1612_v62 = vor.u32 %v1765_v59, %v1609_v60 }
  0x67   : > { %838 = vmatpush.bf16.msra.mxu2 %v1568_v2 }
  0x68   : > { %935 = vmatpush.bf16.msrb.mxu0 %v1580_v5  ;;  %v378_v5 = vld [vmem:[%s2295_s15 + $0x68] sm:$0xff] }
  0x69   : > { %984 = vmatpush.bf16.msrb.mxu1 %v1644_v7  ;;  %v1754_v7 = vld [vmem:[#allocation8 + $0x34] sm:$0xf0]  ;;  %v387_v9 = vpack.c.bf16 %v378_v5, %v377_v4 }
  0x6c   : > { %936 = vmatpush.bf16.msrb.mxu0 %v1572_v14  ;;  %v1752_v14 = vld [vmem:[#allocation8 + $0x24] sm:$0xf0] }
  0x6d   : > { %985 = vmatpush.bf16.msrb.mxu1 %v1636_v16  ;;  %v1552_v15 = vor.u32 %v1752_v14, %v1551_v13  ;;  %v1615_v16 = vld [vmem:[#allocation8 + $0xa0] sm:$0xf]  ;;  %v1784_v13 = vld [vmem:[#allocation10 + $0x28] sm:$0xff] }
  0x6e   : > { %v1616_v18 = vor.u32 %v1768_v17, %v1615_v16  ;;  %v1792_v14 = vld [vmem:[#allocation10 + $0x68] sm:$0xff] }
  0x6f   : > { %504 = vmatmul.bf16.gmra.mxu0 %v382_v1 }
  0x70   : > { %553 = vmatmul.bf16.gmra.mxu1 %v382_v1  ;;  %937 = vmatpush.bf16.msrb.mxu0 %v1564_v23  ;;  %v1772_v1 = vld [vmem:[#allocation8 + $0xc4] sm:$0xf0]  ;;  %v1750_v23 = vld [vmem:[#allocation8 + $0x14] sm:$0xf0] }
  0x71   : > { %986 = vmatpush.bf16.msrb.mxu1 %v1628_v25  ;;  %v1632_v3 = vor.u32 %v1772_v1, %v1631_v0  ;;  %v1544_v25 = vor.u32 %v1750_v23, %v1543_v22 }
  0x73   : > { %887 = vmatpush.bf16.msra.mxu3 %v1632_v3 }
  0x74   : > { %938 = vmatpush.bf16.msrb.mxu0 %v1556_v32  ;;  %v1748_v32 = vld [vmem:[#allocation8 + $0x4] sm:$0xf0] }
  0x75   : > { %987 = vmatpush.bf16.msrb.mxu1 %v1620_v36  ;;  %v380_v36 = vld [vmem:[%s2295_s15 + $0x78] sm:$0xff]  ;;  %v1536_v37 = vor.u32 %v1748_v32, %v1535_v30  ;;  %v1791_v30 = vld [vmem:[#allocation10 + $0x60] sm:$0xff] }
  0x76   : > { %v388_v39 = vpack.c.bf16 %v380_v36, %v379_v35 }
  0x77   : > { %888 = vmatpush.bf16.msra.mxu3 %v1624_v12 }
  0x78   : > { %939 = vmatpush.bf16.msrb.mxu0 %v1548_v53 }
  0x79   : > { %988 = vmatpush.bf16.msrb.mxu1 %v1612_v62  ;;  %v1793_v62 = vld [vmem:[#allocation10 + $0x70] sm:$0xff] }
  0x7b   : > { %889 = vmatpush.bf16.msra.mxu3 %v1616_v18 }
  0x7f   : > { %509 = vmatmul.bf16.gmra.mxu0 %v383_v10  ;;  %890 = vmatpush.bf16.msra.mxu3 %v1608_v27 }
  0x80   : > { %558 = vmatmul.bf16.gmra.mxu1 %v383_v10  ;;  %v1560_v10 = vor.u32 %v1754_v7, %v1559_v6 }
  0x82   : > { %839 = vmatpush.bf16.msra.mxu2 %v1560_v10 }
  0x83   : > { %891 = vmatpush.bf16.msra.mxu3 %v1600_v38 }
  0x86   : > { %840 = vmatpush.bf16.msra.mxu2 %v1552_v15 }
  0x87   : > { %1260 = vmatpush.bf16.msrb.mxu3 %v1794_v46 }
  0x8a   : > { %841 = vmatpush.bf16.msra.mxu2 %v1544_v25 }
  0x8b   : > { %1261 = vmatpush.bf16.msrb.mxu3 %v1793_v62 }
  0x8e   : > { %842 = vmatpush.bf16.msra.mxu2 %v1536_v37 }
  0x8f   : > { %514 = vmatmul.bf16.gmra.mxu0 %v384_v19  ;;  %1262 = vmatpush.bf16.msrb.mxu3 %v1792_v14  ;;  %v1780_v14 = vld [vmem:[#allocation10 + $0x8] sm:$0xff] }
  0x90   : > { %563 = vmatmul.bf16.gmra.mxu1 %v384_v19  ;;  %v1747_v19 = vld [vmem:[#allocation8 + $0x4] sm:$0xf] }
  0x91   : > { %v1540_v21 = vor.u32 %v1747_v19, %v1537_v20 }
  0x92   : > { %1211 = vmatpush.bf16.msrb.mxu2 %v1786_v45 }
  0x93   : > { %940 = vmatpush.bf16.msrb.mxu0 %v1540_v21  ;;  %1263 = vmatpush.bf16.msrb.mxu3 %v1791_v30 }
  0x96   : > { %1212 = vmatpush.bf16.msrb.mxu2 %v1785_v61 }
  0x9a   : > { %1213 = vmatpush.bf16.msrb.mxu2 %v1784_v13 }
  0x9f   : > { %519 = vmatmul.bf16.gmra.mxu0 %v385_v28 }
  0xa0   : > { %568 = vmatmul.bf16.gmra.mxu1 %v385_v28  ;;  %v1763_v28 = vld [vmem:[#allocation8 + $0x84] sm:$0xf] }
  0xa1   : > { %v1604_v31 = vor.u32 %v1763_v28, %v1601_v29  ;;  %v1783_v29 = vld [vmem:[#allocation10 + $0x20] sm:$0xff] }
  0xa2   : > { %1214 = vmatpush.bf16.msrb.mxu2 %v1783_v29 }
  0xa3   : > { %989 = vmatpush.bf16.msrb.mxu1 %v1604_v31 }
  0xaf   : > { %524 = vmatmul.bf16.gmra.mxu0 %v386_v43 }
  0xb0   : > { %573 = vmatmul.bf16.gmra.mxu1 %v386_v43  ;;  %v2325_v43 = vperm.slane %v405_v40, 0 }
  0xbf   : > { %529 = vmatmul.bf16.gmra.mxu0 %v387_v9 }
  0xc0   : > { %578 = vmatmul.bf16.gmra.mxu1 %v387_v9 }
  0xcf   : > { %534 = vmatmul.bf16.gmra.mxu0 %v388_v39 }
  0xd0   : > { %583 = vmatmul.bf16.gmra.mxu1 %v388_v39 }
  0xdc   : > { %v500_v41 = vpop.f32.mrf.mxu0 }
  0xdd   : > { %v549_v42 = vpop.f32.mrf.mxu1  ;;  %v501_v47 = vadd.f32 %v500_v41, %v2325_v43 }
  0xde   : > { %v550_v48 = vadd.f32 %v549_v42, %v2327_v44 }
  0xdf   : > { %v589_v53 = vmax.f32 %v501_v47, 0.0  ;;  %v1782_v47 = vld [vmem:[#allocation10 + $0x18] sm:$0xff] }
  0xe0   : > { %v590_v55 = vmax.f32 %v550_v48, 0.0  ;;  %v1790_v48 = vld [vmem:[#allocation10 + $0x58] sm:$0xff]  ;;  %1215 = vmatpush.bf16.msrb.mxu2 %v1782_v47 }
  0xe1   : > { %1264 = vmatpush.bf16.msrb.mxu3 %v1790_v48 }
  0xe4   : > { %v502_v49 = vpop.f32.mrf.mxu0 }
  0xe5   : > { %v503_v50 = vadd.f32 %v502_v49, %v2325_v43  ;;  %v551_v51 = vpop.f32.mrf.mxu1 }
  0xe6   : > { %v552_v52 = vadd.f32 %v551_v51, %v2327_v44 }
  0xe7   : > { %v591_v54 = vmax.f32 %v503_v50, 0.0 }
  0xe8   : > { %v592_v56 = vmax.f32 %v552_v52, 0.0 }
  0xe9   : > { %v621_v57 = vpack.c.bf16 %v591_v54, %v589_v53 }
  0xea   : > { %v622_v58 = vpack.c.bf16 %v592_v56, %v590_v55 }
  0xeb   : > { %843 = vmatmul.bf16.vlgmr.msra.gmra.mxu2 %v621_v57  ;;  %941 = vmatmul.bf16.vlgmr.msrb.gmra.mxu0 %v621_v57 }
  0xec   : > { %892 = vmatmul.bf16.vlgmr.msra.gmra.mxu3 %v622_v58  ;;  %990 = vmatmul.bf16.vlgmr.msrb.gmra.mxu1 %v622_v58  ;;  %v505_v59 = vpop.f32.mrf.mxu0 }
  0xed   : > { %v554_v60 = vpop.f32.mrf.mxu1  ;;  %v506_v63 = vadd.f32 %v505_v59, %v2325_v43 }
  0xee   : > { %v555_v0 = vadd.f32 %v554_v60, %v2327_v44 }
  0xef   : > { %v593_v5 = vmax.f32 %v506_v63, 0.0  ;;  %v1781_v63 = vld [vmem:[#allocation10 + $0x10] sm:$0xff] }
  0xf0   : > { %v594_v7 = vmax.f32 %v555_v0, 0.0  ;;  %v1789_v0 = vld [vmem:[#allocation10 + $0x50] sm:$0xff]  ;;  %1216 = vmatpush.bf16.msrb.mxu2 %v1781_v63 }
  0xf1   : > { %1265 = vmatpush.bf16.msrb.mxu3 %v1789_v0 }
  0xf4   : > { %v507_v1 = vpop.f32.mrf.mxu0  ;;  %1217 = vmatpush.bf16.msrb.mxu2 %v1780_v14 }
  0xf5   : > { %v508_v2 = vadd.f32 %v507_v1, %v2325_v43  ;;  %v556_v3 = vpop.f32.mrf.mxu1 }
  0xf6   : > { %v557_v4 = vadd.f32 %v556_v3, %v2327_v44 }
  0xf7   : > { %v595_v6 = vmax.f32 %v508_v2, 0.0 }
  0xf8   : > { %v596_v8 = vmax.f32 %v557_v4, 0.0 }
  0xf9   : > { %v623_v9 = vpack.c.bf16 %v595_v6, %v593_v5 }
  0xfa   : > { %v624_v10 = vpack.c.bf16 %v596_v8, %v594_v7 }
  0xfb   : > { %848 = vmatmul.bf16.gmra.mxu2 %v623_v9  ;;  %946 = vmatmul.bf16.gmra.mxu0 %v623_v9 }
  0xfc   : > { %897 = vmatmul.bf16.gmra.mxu3 %v624_v10  ;;  %995 = vmatmul.bf16.gmra.mxu1 %v624_v10  ;;  %v510_v11 = vpop.f32.mrf.mxu0 }
  0xfd   : > { %v559_v12 = vpop.f32.mrf.mxu1  ;;  %v511_v15 = vadd.f32 %v510_v11, %v2325_v43 }
  0xfe   : > { %v560_v16 = vadd.f32 %v559_v12, %v2327_v44 }
  0xff   : > { %v597_v21 = vmax.f32 %v511_v15, 0.0  ;;  %v1788_v15 = vld [vmem:[#allocation10 + $0x48] sm:$0xff] }
 0x100   : > { %v598_v23 = vmax.f32 %v560_v16, 0.0  ;;  %1266 = vmatpush.bf16.msrb.mxu3 %v1788_v15 }
 0x104   : > { %v512_v17 = vpop.f32.mrf.mxu0 }
 0x105   : > { %v513_v18 = vadd.f32 %v512_v17, %v2325_v43  ;;  %v561_v19 = vpop.f32.mrf.mxu1 }
 0x106   : > { %v562_v20 = vadd.f32 %v561_v19, %v2327_v44 }
 0x107   : > { %v599_v22 = vmax.f32 %v513_v18, 0.0 }
 0x108   : > { %v600_v24 = vmax.f32 %v562_v20, 0.0 }
 0x109   : > { %v625_v25 = vpack.c.bf16 %v599_v22, %v597_v21 }
 0x10a   : > { %v626_v26 = vpack.c.bf16 %v600_v24, %v598_v23 }
 0x10b   : > { %853 = vmatmul.bf16.gmra.mxu2 %v625_v25  ;;  %951 = vmatmul.bf16.gmra.mxu0 %v625_v25 }
 0x10c   : > { %902 = vmatmul.bf16.gmra.mxu3 %v626_v26  ;;  %1000 = vmatmul.bf16.gmra.mxu1 %v626_v26  ;;  %v515_v27 = vpop.f32.mrf.mxu0 }
 0x10d   : > { %v564_v28 = vpop.f32.mrf.mxu1  ;;  %v516_v31 = vadd.f32 %v515_v27, %v2325_v43 }
 0x10e   : > { %v565_v32 = vadd.f32 %v564_v28, %v2327_v44 }
 0x10f   : > { %v601_v37 = vmax.f32 %v516_v31, 0.0 }
 0x110   : > { %v602_v39 = vmax.f32 %v565_v32, 0.0  ;;  %v1779_v32 = vld [vmem:[#allocation10] sm:$0xff] }
 0x111   : > { %1218 = vmatpush.bf16.msrb.mxu2 %v1779_v32 }
 0x114   : > { %v517_v33 = vpop.f32.mrf.mxu0 }
 0x115   : > { %v518_v34 = vadd.f32 %v517_v33, %v2325_v43  ;;  %v566_v35 = vpop.f32.mrf.mxu1 }
 0x116   : > { %v567_v36 = vadd.f32 %v566_v35, %v2327_v44 }
 0x117   : > { %v603_v38 = vmax.f32 %v518_v34, 0.0 }
 0x118   : > { %v604_v40 = vmax.f32 %v567_v36, 0.0 }
 0x119   : > { %v627_v41 = vpack.c.bf16 %v603_v38, %v601_v37  ;;  %v1787_v37 = vld [vmem:[#allocation10 + $0x40] sm:$0xff] }
 0x11a   : > { %v628_v42 = vpack.c.bf16 %v604_v40, %v602_v39  ;;  %1267 = vmatpush.bf16.msrb.mxu3 %v1787_v37 }
 0x11b   : > { %858 = vmatmul.bf16.gmra.mxu2 %v627_v41  ;;  %956 = vmatmul.bf16.gmra.mxu0 %v627_v41 }
 0x11c   : > { %907 = vmatmul.bf16.gmra.mxu3 %v628_v42  ;;  %1005 = vmatmul.bf16.gmra.mxu1 %v628_v42  ;;  %v520_v45 = vpop.f32.mrf.mxu0 }
 0x11d   : > { %v569_v46 = vpop.f32.mrf.mxu1  ;;  %v521_v49 = vadd.f32 %v520_v45, %v2325_v43 }
 0x11e   : > { %v570_v50 = vadd.f32 %v569_v46, %v2327_v44 }
 0x11f   : > { %v605_v55 = vmax.f32 %v521_v49, 0.0 }
 0x120   : > { %v606_v57 = vmax.f32 %v570_v50, 0.0 }
 0x124   : > { %v522_v51 = vpop.f32.mrf.mxu0 }
 0x125   : > { %v523_v52 = vadd.f32 %v522_v51, %v2325_v43  ;;  %v571_v53 = vpop.f32.mrf.mxu1 }
 0x126   : > { %v572_v54 = vadd.f32 %v571_v53, %v2327_v44 }
 0x127   : > { %v607_v56 = vmax.f32 %v523_v52, 0.0 }
 0x128   : > { %v608_v58 = vmax.f32 %v572_v54, 0.0 }
 0x129   : > { %v629_v59 = vpack.c.bf16 %v607_v56, %v605_v55 }
 0x12a   : > { %v630_v60 = vpack.c.bf16 %v608_v58, %v606_v57 }
 0x12b   : > { %863 = vmatmul.bf16.gmra.mxu2 %v629_v59  ;;  %961 = vmatmul.bf16.gmra.mxu0 %v629_v59 }
 0x12c   : > { %912 = vmatmul.bf16.gmra.mxu3 %v630_v60  ;;  %1010 = vmatmul.bf16.gmra.mxu1 %v630_v60  ;;  %v525_v61 = vpop.f32.mrf.mxu0 }
 0x12d   : > { %v574_v62 = vpop.f32.mrf.mxu1  ;;  %v526_v1 = vadd.f32 %v525_v61, %v2325_v43 }
 0x12e   : > { %v575_v2 = vadd.f32 %v574_v62, %v2327_v44 }
 0x12f   : > { %v609_v7 = vmax.f32 %v526_v1, 0.0 }
 0x130   : > { %v610_v9 = vmax.f32 %v575_v2, 0.0 }
 0x134   : > { %v527_v3 = vpop.f32.mrf.mxu0 }
 0x135   : > { %v528_v4 = vadd.f32 %v527_v3, %v2325_v43  ;;  %v576_v5 = vpop.f32.mrf.mxu1 }
 0x136   : > { %v577_v6 = vadd.f32 %v576_v5, %v2327_v44 }
 0x137   : > { %v611_v8 = vmax.f32 %v528_v4, 0.0 }
 0x138   : > { %v612_v10 = vmax.f32 %v577_v6, 0.0 }
 0x139   : > { %v631_v11 = vpack.c.bf16 %v611_v8, %v609_v7 }
 0x13a   : > { %v632_v12 = vpack.c.bf16 %v612_v10, %v610_v9 }
 0x13b   : > { %868 = vmatmul.bf16.gmra.mxu2 %v631_v11  ;;  %966 = vmatmul.bf16.gmra.mxu0 %v631_v11 }
 0x13c   : > { %917 = vmatmul.bf16.gmra.mxu3 %v632_v12  ;;  %1015 = vmatmul.bf16.gmra.mxu1 %v632_v12  ;;  %v530_v13 = vpop.f32.mrf.mxu0 }
 0x13d   : > { %v579_v16 = vpop.f32.mrf.mxu1  ;;  %v531_v17 = vadd.f32 %v530_v13, %v2325_v43 }
 0x13e   : > { %v580_v18 = vadd.f32 %v579_v16, %v2327_v44 }
 0x13f   : > { %v613_v23 = vmax.f32 %v531_v17, 0.0 }
 0x140   : > { %v614_v25 = vmax.f32 %v580_v18, 0.0 }
 0x144   : > { %v532_v19 = vpop.f32.mrf.mxu0 }
 0x145   : > { %v533_v20 = vadd.f32 %v532_v19, %v2325_v43  ;;  %v581_v21 = vpop.f32.mrf.mxu1 }
 0x146   : > { %v582_v22 = vadd.f32 %v581_v21, %v2327_v44 }
 0x147   : > { %v615_v24 = vmax.f32 %v533_v20, 0.0 }
 0x148   : > { %v616_v26 = vmax.f32 %v582_v22, 0.0 }
 0x149   : > { %v633_v27 = vpack.c.bf16 %v615_v24, %v613_v23 }
 0x14a   : > { %v634_v28 = vpack.c.bf16 %v616_v26, %v614_v25 }
 0x14b   : > { %873 = vmatmul.bf16.gmra.mxu2 %v633_v27  ;;  %971 = vmatmul.bf16.gmra.mxu0 %v633_v27 }
 0x14c   : > { %922 = vmatmul.bf16.gmra.mxu3 %v634_v28  ;;  %1020 = vmatmul.bf16.gmra.mxu1 %v634_v28  ;;  %v535_v29 = vpop.f32.mrf.mxu0 }
 0x14d   : > { %v584_v30 = vpop.f32.mrf.mxu1  ;;  %v536_v31 = vadd.f32 %v535_v29, %v2325_v43 }
 0x14e   : > { %v585_v33 = vadd.f32 %v584_v30, %v2327_v44 }
 0x14f   : > { %v617_v39 = vmax.f32 %v536_v31, 0.0 }
 0x150   : > { %v618_v41 = vmax.f32 %v585_v33, 0.0 }
 0x154   : > { %v537_v34 = vpop.f32.mrf.mxu0 }
 0x155   : > { %v538_v35 = vadd.f32 %v537_v34, %v2325_v43  ;;  %v586_v36 = vpop.f32.mrf.mxu1  ;;  %v669_v43 = vld [vmem:[%s2479_s4] sm:$0x3] }
 0x156   : > { %v587_v38 = vadd.f32 %v586_v36, %v2327_v44  ;;  %v2364_v48 = vperm.slane %v669_v43, 1  ;;  %v2367_v51 = vperm.slane %v669_v43, 0 }
 0x157   : > { %v619_v40 = vmax.f32 %v538_v35, 0.0 }
 0x158   : > { %v620_v42 = vmax.f32 %v587_v38, 0.0 }
 0x159   : > { %v635_v45 = vpack.c.bf16 %v619_v40, %v617_v39 }
 0x15a   : > { %v636_v46 = vpack.c.bf16 %v620_v42, %v618_v41 }
 0x15b   : > { %878 = vmatmul.bf16.gmra.mxu2 %v635_v45  ;;  %976 = vmatmul.bf16.gmra.mxu0 %v635_v45 }
 0x15c   : > { %927 = vmatmul.bf16.gmra.mxu3 %v636_v46  ;;  %1025 = vmatmul.bf16.gmra.mxu1 %v636_v46 }
 0x168   : > { %v942_v47 = vpop.f32.mrf.mxu0 }
 0x169   : > { %v991_v49 = vpop.f32.mrf.mxu1  ;;  %v943_v44 = vadd.f32 %v942_v47, %v2364_v48 }
 0x16b   : > { %v992_v54 = vadd.f32 %v991_v49, %v943_v44 }
 0x16d   : > { %v1032_v59 = vmax.f32 %v992_v54, 0.0 }
 0x16e   : > { %v844_v50 = vpop.f32.mrf.mxu2 }
 0x16f   : > { %v893_v52 = vpop.f32.mrf.mxu3  ;;  %v845_v57 = vadd.f32 %v844_v50, %v2367_v51 }
 0x170   : > { %v944_v53 = vpop.f32.mrf.mxu0 }
 0x171   : > { %v945_v55 = vadd.f32 %v944_v53, %v2364_v48  ;;  %v993_v56 = vpop.f32.mrf.mxu1  ;;  %v894_v62 = vadd.f32 %v893_v52, %v845_v57 }
 0x173   : > { %v994_v58 = vadd.f32 %v993_v56, %v945_v55  ;;  %v1031_v5 = vmax.f32 %v894_v62, 0.0 }
 0x175   : > { %v1034_v60 = vmax.f32 %v994_v58, 0.0 }
 0x176   : > { %v846_v61 = vpop.f32.mrf.mxu2 }
 0x177   : > { %v1064_v63 = vpack.c.bf16 %v1034_v60, %v1032_v59  ;;  %v847_v0 = vadd.f32 %v846_v61, %v2367_v51  ;;  %v895_v1 = vpop.f32.mrf.mxu3 }
 0x178   : > { %v947_v2 = vpop.f32.mrf.mxu0 }
 0x179   : > { %v896_v3 = vadd.f32 %v895_v1, %v847_v0  ;;  %v996_v4 = vpop.f32.mrf.mxu1  ;;  %1268 = vmatmul.bf16.vlgmr.msrb.gmra.mxu3 %v1064_v63  ;;  %v948_v7 = vadd.f32 %v947_v2, %v2364_v48 }
 0x17b   : > { %v1033_v6 = vmax.f32 %v896_v3, 0.0  ;;  %v997_v12 = vadd.f32 %v996_v4, %v948_v7 }
 0x17d   : > { %v1063_v8 = vpack.c.bf16 %v1033_v6, %v1031_v5  ;;  %v1036_v17 = vmax.f32 %v997_v12, 0.0 }
 0x17e   : > { %v849_v9 = vpop.f32.mrf.mxu2 }
 0x17f   : > { %v898_v10 = vpop.f32.mrf.mxu3  ;;  %1219 = vmatmul.bf16.vlgmr.msrb.gmra.mxu2 %v1063_v8  ;;  %v850_v15 = vadd.f32 %v849_v9, %v2367_v51 }
 0x180   : > { %v949_v11 = vpop.f32.mrf.mxu0 }
 0x181   : > { %v950_v13 = vadd.f32 %v949_v11, %v2364_v48  ;;  %v998_v14 = vpop.f32.mrf.mxu1  ;;  %v899_v20 = vadd.f32 %v898_v10, %v850_v15 }
 0x183   : > { %v999_v16 = vadd.f32 %v998_v14, %v950_v13  ;;  %v1035_v27 = vmax.f32 %v899_v20, 0.0 }
 0x185   : > { %v1038_v18 = vmax.f32 %v999_v16, 0.0 }
 0x186   : > { %v851_v19 = vpop.f32.mrf.mxu2 }
 0x187   : > { %v852_v21 = vadd.f32 %v851_v19, %v2367_v51  ;;  %v900_v22 = vpop.f32.mrf.mxu3  ;;  %v1066_v23 = vpack.c.bf16 %v1038_v18, %v1036_v17 }
 0x188   : > { %v952_v24 = vpop.f32.mrf.mxu0 }
 0x189   : > { %v901_v25 = vadd.f32 %v900_v22, %v852_v21  ;;  %v1001_v26 = vpop.f32.mrf.mxu1  ;;  %1273 = vmatmul.bf16.gmra.mxu3 %v1066_v23  ;;  %v953_v29 = vadd.f32 %v952_v24, %v2364_v48 }
 0x18b   : > { %v1037_v28 = vmax.f32 %v901_v25, 0.0  ;;  %v1002_v34 = vadd.f32 %v1001_v26, %v953_v29 }
 0x18d   : > { %v1065_v30 = vpack.c.bf16 %v1037_v28, %v1035_v27  ;;  %v1040_v39 = vmax.f32 %v1002_v34, 0.0 }
 0x18e   : > { %v854_v31 = vpop.f32.mrf.mxu2 }
 0x18f   : > { %v903_v32 = vpop.f32.mrf.mxu3  ;;  %1224 = vmatmul.bf16.gmra.mxu2 %v1065_v30  ;;  %v855_v37 = vadd.f32 %v854_v31, %v2367_v51 }
 0x190   : > { %v954_v33 = vpop.f32.mrf.mxu0 }
 0x191   : > { %v955_v35 = vadd.f32 %v954_v33, %v2364_v48  ;;  %v1003_v36 = vpop.f32.mrf.mxu1  ;;  %v904_v42 = vadd.f32 %v903_v32, %v855_v37 }
 0x193   : > { %v1004_v38 = vadd.f32 %v1003_v36, %v955_v35  ;;  %v1039_v50 = vmax.f32 %v904_v42, 0.0 }
 0x195   : > { %v1042_v40 = vmax.f32 %v1004_v38, 0.0 }
 0x196   : > { %v856_v41 = vpop.f32.mrf.mxu2 }
 0x197   : > { %v857_v45 = vadd.f32 %v856_v41, %v2367_v51  ;;  %v905_v46 = vpop.f32.mrf.mxu3  ;;  %v1068_v43 = vpack.c.bf16 %v1042_v40, %v1040_v39 }
 0x198   : > { %v957_v47 = vpop.f32.mrf.mxu0 }
 0x199   : > { %v906_v49 = vadd.f32 %v905_v46, %v857_v45  ;;  %v1006_v44 = vpop.f32.mrf.mxu1  ;;  %1278 = vmatmul.bf16.gmra.mxu3 %v1068_v43  ;;  %v958_v53 = vadd.f32 %v957_v47, %v2364_v48 }
 0x19b   : > { %v1041_v52 = vmax.f32 %v906_v49, 0.0  ;;  %v1007_v58 = vadd.f32 %v1006_v44, %v958_v53 }
 0x19d   : > { %v1067_v54 = vpack.c.bf16 %v1041_v52, %v1039_v50  ;;  %v1044_v63 = vmax.f32 %v1007_v58, 0.0 }
 0x19e   : > { %v859_v55 = vpop.f32.mrf.mxu2 }
 0x19f   : > { %v908_v56 = vpop.f32.mrf.mxu3  ;;  %1229 = vmatmul.bf16.gmra.mxu2 %v1067_v54  ;;  %v860_v61 = vadd.f32 %v859_v55, %v2367_v51 }
 0x1a0   : > { %v959_v57 = vpop.f32.mrf.mxu0 }
 0x1a1   : > { %v960_v59 = vadd.f32 %v959_v57, %v2364_v48  ;;  %v1008_v60 = vpop.f32.mrf.mxu1  ;;  %v909_v2 = vadd.f32 %v908_v56, %v860_v61 }
 0x1a3   : > { %v1009_v62 = vadd.f32 %v1008_v60, %v960_v59  ;;  %v1043_v9 = vmax.f32 %v909_v2, 0.0 }
 0x1a5   : > { %v1046_v0 = vmax.f32 %v1009_v62, 0.0 }
 0x1a6   : > { %v861_v1 = vpop.f32.mrf.mxu2 }
 0x1a7   : > { %v862_v3 = vadd.f32 %v861_v1, %v2367_v51  ;;  %v910_v4 = vpop.f32.mrf.mxu3  ;;  %v1070_v5 = vpack.c.bf16 %v1046_v0, %v1044_v63 }
 0x1a8   : > { %v962_v6 = vpop.f32.mrf.mxu0 }
 0x1a9   : > { %v911_v7 = vadd.f32 %v910_v4, %v862_v3  ;;  %v1011_v8 = vpop.f32.mrf.mxu1  ;;  %1283 = vmatmul.bf16.gmra.mxu3 %v1070_v5  ;;  %v963_v11 = vadd.f32 %v962_v6, %v2364_v48 }
 0x1ab   : > { %v1045_v10 = vmax.f32 %v911_v7, 0.0  ;;  %v1012_v16 = vadd.f32 %v1011_v8, %v963_v11 }
 0x1ad   : > { %v1069_v12 = vpack.c.bf16 %v1045_v10, %v1043_v9  ;;  %v1048_v21 = vmax.f32 %v1012_v16, 0.0 }
 0x1ae   : > { %v864_v13 = vpop.f32.mrf.mxu2 }
 0x1af   : > { %v913_v14 = vpop.f32.mrf.mxu3  ;;  %1234 = vmatmul.bf16.gmra.mxu2 %v1069_v12  ;;  %v865_v19 = vadd.f32 %v864_v13, %v2367_v51 }
 0x1b0   : > { %v964_v15 = vpop.f32.mrf.mxu0 }
 0x1b1   : > { %v965_v17 = vadd.f32 %v964_v15, %v2364_v48  ;;  %v1013_v18 = vpop.f32.mrf.mxu1  ;;  %v914_v24 = vadd.f32 %v913_v14, %v865_v19 }
 0x1b3   : > { %v1014_v20 = vadd.f32 %v1013_v18, %v965_v17  ;;  %v1047_v31 = vmax.f32 %v914_v24, 0.0 }
 0x1b5   : > { %v1050_v22 = vmax.f32 %v1014_v20, 0.0 }
 0x1b6   : > { %v866_v23 = vpop.f32.mrf.mxu2 }
 0x1b7   : > { %v1072_v25 = vpack.c.bf16 %v1050_v22, %v1048_v21  ;;  %v867_v26 = vadd.f32 %v866_v23, %v2367_v51  ;;  %v915_v27 = vpop.f32.mrf.mxu3 }
 0x1b8   : > { %v967_v28 = vpop.f32.mrf.mxu0 }
 0x1b9   : > { %v916_v29 = vadd.f32 %v915_v27, %v867_v26  ;;  %v1016_v30 = vpop.f32.mrf.mxu1  ;;  %1288 = vmatmul.bf16.gmra.mxu3 %v1072_v25  ;;  %v968_v34 = vadd.f32 %v967_v28, %v2364_v48 }
 0x1bb   : > { %v1049_v32 = vmax.f32 %v916_v29, 0.0  ;;  %v1017_v38 = vadd.f32 %v1016_v30, %v968_v34 }
 0x1bd   : > { %v1071_v33 = vpack.c.bf16 %v1049_v32, %v1047_v31  ;;  %v1052_v45 = vmax.f32 %v1017_v38, 0.0 }
 0x1be   : > { %v869_v35 = vpop.f32.mrf.mxu2 }
 0x1bf   : > { %v918_v36 = vpop.f32.mrf.mxu3  ;;  %1239 = vmatmul.bf16.gmra.mxu2 %v1071_v33  ;;  %v870_v41 = vadd.f32 %v869_v35, %v2367_v51 }
 0x1c0   : > { %v969_v37 = vpop.f32.mrf.mxu0 }
 0x1c1   : > { %v970_v39 = vadd.f32 %v969_v37, %v2364_v48  ;;  %v1018_v40 = vpop.f32.mrf.mxu1  ;;  %v919_v47 = vadd.f32 %v918_v36, %v870_v41  ;;  %v2403_v36 = vld [vmem:[%s2481_s6] ss:$0 sm:$0xff] }
 0x1c3   : > { %v1019_v42 = vadd.f32 %v1018_v40, %v970_v39  ;;  %v1051_v55 = vmax.f32 %v919_v47, 0.0 }
 0x1c5   : > { %v1054_v46 = vmax.f32 %v1019_v42, 0.0 }
 0x1c6   : > { %v871_v43 = vpop.f32.mrf.mxu2 }
 0x1c7   : > { %v1074_v49 = vpack.c.bf16 %v1054_v46, %v1052_v45  ;;  %v872_v44 = vadd.f32 %v871_v43, %v2367_v51  ;;  %v920_v50 = vpop.f32.mrf.mxu3 }
 0x1c8   : > { %v972_v52 = vpop.f32.mrf.mxu0 }
 0x1c9   : > { %v921_v53 = vadd.f32 %v920_v50, %v872_v44  ;;  %v1021_v54 = vpop.f32.mrf.mxu1  ;;  %1293 = vmatmul.bf16.gmra.mxu3 %v1074_v49  ;;  %v973_v58 = vadd.f32 %v972_v52, %v2364_v48 }
 0x1cb   : > { %v1053_v56 = vmax.f32 %v921_v53, 0.0  ;;  %v1022_v62 = vadd.f32 %v1021_v54, %v973_v58 }
 0x1cd   : > { %v1073_v57 = vpack.c.bf16 %v1053_v56, %v1051_v55  ;;  %v1056_v3 = vmax.f32 %v1022_v62, 0.0 }
 0x1ce   : > { %v874_v59 = vpop.f32.mrf.mxu2 }
 0x1cf   : > { %v923_v60 = vpop.f32.mrf.mxu3  ;;  %1244 = vmatmul.bf16.gmra.mxu2 %v1073_v57  ;;  %v875_v1 = vadd.f32 %v874_v59, %v2367_v51 }
 0x1d0   : > { %v974_v61 = vpop.f32.mrf.mxu0 }
 0x1d1   : > { %v975_v63 = vadd.f32 %v974_v61, %v2364_v48  ;;  %v1023_v0 = vpop.f32.mrf.mxu1  ;;  %v924_v6 = vadd.f32 %v923_v60, %v875_v1 }
 0x1d3   : > { %v1024_v2 = vadd.f32 %v1023_v0, %v975_v63  ;;  %v1055_v13 = vmax.f32 %v924_v6, 0.0 }
 0x1d5   : > { %v1058_v4 = vmax.f32 %v1024_v2, 0.0 }
 0x1d6   : > { %v876_v5 = vpop.f32.mrf.mxu2 }
 0x1d7   : > { %v1076_v7 = vpack.c.bf16 %v1058_v4, %v1056_v3  ;;  %v877_v8 = vadd.f32 %v876_v5, %v2367_v51  ;;  %v925_v9 = vpop.f32.mrf.mxu3 }
 0x1d8   : > { %v977_v10 = vpop.f32.mrf.mxu0 }
 0x1d9   : > { %v926_v11 = vadd.f32 %v925_v9, %v877_v8  ;;  %v1026_v12 = vpop.f32.mrf.mxu1  ;;  %1298 = vmatmul.bf16.gmra.mxu3 %v1076_v7  ;;  %v978_v16 = vadd.f32 %v977_v10, %v2364_v48 }
 0x1db   : > { %v1057_v14 = vmax.f32 %v926_v11, 0.0  ;;  %v1027_v20 = vadd.f32 %v1026_v12, %v978_v16 }
 0x1dd   : > { %v1075_v15 = vpack.c.bf16 %v1057_v14, %v1055_v13  ;;  %v1060_v25 = vmax.f32 %v1027_v20, 0.0 }
 0x1de   : > { %v879_v17 = vpop.f32.mrf.mxu2 }
 0x1df   : > { %v928_v18 = vpop.f32.mrf.mxu3  ;;  %1249 = vmatmul.bf16.gmra.mxu2 %v1075_v15  ;;  %v880_v23 = vadd.f32 %v879_v17, %v2367_v51 }
 0x1e0   : > { %v979_v19 = vpop.f32.mrf.mxu0 }
 0x1e1   : > { %v980_v21 = vadd.f32 %v979_v19, %v2364_v48  ;;  %v1028_v22 = vpop.f32.mrf.mxu1  ;;  %v929_v28 = vadd.f32 %v928_v18, %v880_v23 }
 0x1e3   : > { %v1029_v24 = vadd.f32 %v1028_v22, %v980_v21  ;;  %v1059_v33 = vmax.f32 %v929_v28, 0.0 }
 0x1e5   : > { %v1062_v26 = vmax.f32 %v1029_v24, 0.0 }
 0x1e6   : > { %v881_v27 = vpop.f32.mrf.mxu2 }
 0x1e7   : > { %v1078_v29 = vpack.c.bf16 %v1062_v26, %v1060_v25  ;;  %v882_v30 = vadd.f32 %v881_v27, %v2367_v51  ;;  %v930_v31 = vpop.f32.mrf.mxu3 }
 0x1e9   : > { %v931_v32 = vadd.f32 %v930_v31, %v882_v30  ;;  %1303 = vmatmul.bf16.gmra.mxu3 %v1078_v29 }
 0x1eb   : > { %v1061_v34 = vmax.f32 %v931_v32, 0.0 }
 0x1ed   : > { %v1077_v35 = vpack.c.bf16 %v1061_v34, %v1059_v33 }
 0x1ef   : > { %1254 = vmatmul.bf16.gmra.mxu2 %v1077_v35 }
 0x1fc   : > { %v1269_v48 = vpop.f32.mrf.mxu3 }
 0x202   : > { %v1220_v37 = vpop.f32.mrf.mxu2 }
 0x203   : > { %v1221_v38 = vadd.f32 %v2403_v36, %v1220_v37 }
 0x204   : > { %v1271_v39 = vpop.f32.mrf.mxu3 }
 0x205   : > { %v1270_v40 = vadd.f32 %v1269_v48, %v1221_v38 }
 0x207   : > { %1309 = vst [vmem:[%s2408_s29] sm:$0xff] %v1270_v40 }
 0x20a   : > { %v1222_v51 = vpop.f32.mrf.mxu2 }
 0x20b   : > { %v1223_v41 = vadd.f32 %v2403_v36, %v1222_v51 }
 0x20c   : > { %v1274_v42 = vpop.f32.mrf.mxu3 }
 0x20d   : > { %v1272_v45 = vadd.f32 %v1271_v39, %v1223_v41 }
 0x20f   : > { %1310 = vst [vmem:[%s2408_s29 + $0x8] sm:$0xff] %v1272_v45 }
 0x212   : > { %v1225_v46 = vpop.f32.mrf.mxu2 }
 0x213   : > { %v1226_v43 = vadd.f32 %v2403_v36, %v1225_v46 }
 0x214   : > { %v1276_v47 = vpop.f32.mrf.mxu3 }
 0x215   : > { %v1275_v49 = vadd.f32 %v1274_v42, %v1226_v43 }
 0x217   : > { %1311 = vst [vmem:[%s2408_s29 + $0x10] sm:$0xff] %v1275_v49 }
 0x21a   : > { %v1227_v44 = vpop.f32.mrf.mxu2 }
 0x21b   : > { %v1228_v50 = vadd.f32 %v2403_v36, %v1227_v44 }
 0x21c   : > { %v1279_v52 = vpop.f32.mrf.mxu3 }
 0x21d   : > { %v1277_v53 = vadd.f32 %v1276_v47, %v1228_v50 }
 0x21f   : > { %1312 = vst [vmem:[%s2408_s29 + $0x18] sm:$0xff] %v1277_v53 }
 0x222   : > { %v1230_v54 = vpop.f32.mrf.mxu2 }
 0x223   : > { %v1231_v55 = vadd.f32 %v2403_v36, %v1230_v54 }
 0x224   : > { %v1281_v56 = vpop.f32.mrf.mxu3 }
 0x225   : > { %v1280_v57 = vadd.f32 %v1279_v52, %v1231_v55 }
 0x227   : > { %1313 = vst [vmem:[%s2408_s29 + $0x20] sm:$0xff] %v1280_v57 }
 0x22a   : > { %v1232_v58 = vpop.f32.mrf.mxu2 }
 0x22b   : > { %v1233_v59 = vadd.f32 %v2403_v36, %v1232_v58 }
 0x22c   : > { %v1284_v60 = vpop.f32.mrf.mxu3 }
 0x22d   : > { %v1282_v61 = vadd.f32 %v1281_v56, %v1233_v59 }
 0x22f   : > { %1314 = vst [vmem:[%s2408_s29 + $0x28] sm:$0xff] %v1282_v61 }
 0x232   : > { %v1235_v62 = vpop.f32.mrf.mxu2 }
 0x233   : > { %v1236_v63 = vadd.f32 %v2403_v36, %v1235_v62 }
 0x234   : > { %v1286_v0 = vpop.f32.mrf.mxu3 }
 0x235   : > { %v1285_v1 = vadd.f32 %v1284_v60, %v1236_v63 }
 0x237   : > { %1315 = vst [vmem:[%s2408_s29 + $0x30] sm:$0xff] %v1285_v1 }
 0x23a   : > { %v1237_v2 = vpop.f32.mrf.mxu2 }
 0x23b   : > { %v1238_v3 = vadd.f32 %v2403_v36, %v1237_v2 }
 0x23c   : > { %v1289_v4 = vpop.f32.mrf.mxu3 }
 0x23d   : > { %v1287_v5 = vadd.f32 %v1286_v0, %v1238_v3 }
 0x23f   : > { %1316 = vst [vmem:[%s2408_s29 + $0x38] sm:$0xff] %v1287_v5 }
 0x242   : > { %v1240_v6 = vpop.f32.mrf.mxu2 }
 0x243   : > { %v1241_v7 = vadd.f32 %v2403_v36, %v1240_v6 }
 0x244   : > { %v1291_v8 = vpop.f32.mrf.mxu3 }
 0x245   : > { %v1290_v9 = vadd.f32 %v1289_v4, %v1241_v7 }
 0x247   : > { %1317 = vst [vmem:[%s2408_s29 + $0x40] sm:$0xff] %v1290_v9 }
 0x24a   : > { %v1242_v10 = vpop.f32.mrf.mxu2 }
 0x24b   : > { %v1243_v11 = vadd.f32 %v2403_v36, %v1242_v10 }
 0x24c   : > { %v1294_v12 = vpop.f32.mrf.mxu3 }
 0x24d   : > { %v1292_v13 = vadd.f32 %v1291_v8, %v1243_v11 }
 0x24f   : > { %1318 = vst [vmem:[%s2408_s29 + $0x48] sm:$0xff] %v1292_v13 }
 0x252   : > { %v1245_v14 = vpop.f32.mrf.mxu2 }
 0x253   : > { %v1246_v15 = vadd.f32 %v2403_v36, %v1245_v14 }
 0x254   : > { %v1296_v16 = vpop.f32.mrf.mxu3 }
 0x255   : > { %v1295_v17 = vadd.f32 %v1294_v12, %v1246_v15 }
 0x257   : > { %1319 = vst [vmem:[%s2408_s29 + $0x50] sm:$0xff] %v1295_v17 }
 0x25a   : > { %v1247_v18 = vpop.f32.mrf.mxu2 }
 0x25b   : > { %v1248_v19 = vadd.f32 %v2403_v36, %v1247_v18 }
 0x25c   : > { %v1299_v21 = vpop.f32.mrf.mxu3 }
 0x25d   : > { %v1297_v20 = vadd.f32 %v1296_v16, %v1248_v19 }
 0x25f   : > { %1320 = vst [vmem:[%s2408_s29 + $0x58] sm:$0xff] %v1297_v20 }
 0x262   : > { %v1250_v22 = vpop.f32.mrf.mxu2 }
 0x263   : > { %v1251_v23 = vadd.f32 %v2403_v36, %v1250_v22 }
 0x264   : > { %v1301_v25 = vpop.f32.mrf.mxu3 }
 0x265   : > { %v1300_v24 = vadd.f32 %v1299_v21, %v1251_v23 }
 0x267   : > { %1321 = vst [vmem:[%s2408_s29 + $0x60] sm:$0xff] %v1300_v24 }
 0x26a   : > { %v1252_v26 = vpop.f32.mrf.mxu2 }
 0x26b   : > { %v1253_v27 = vadd.f32 %v2403_v36, %v1252_v26 }
 0x26c   : > { %v1304_v29 = vpop.f32.mrf.mxu3 }
 0x26d   : > { %v1302_v28 = vadd.f32 %v1301_v25, %v1253_v27 }
 0x26f   : > { %1322 = vst [vmem:[%s2408_s29 + $0x68] sm:$0xff] %v1302_v28 }
 0x272   : > { %v1255_v30 = vpop.f32.mrf.mxu2 }
 0x273   : > { %v1256_v31 = vadd.f32 %v2403_v36, %v1255_v30 }
 0x274   : > { %v1306_v35 = vpop.f32.mrf.mxu3 }
 0x275   : > { %v1305_v32 = vadd.f32 %v1304_v29, %v1256_v31 }
 0x277   : > { %1323 = vst [vmem:[%s2408_s29 + $0x70] sm:$0xff] %v1305_v32 }
 0x27a   : > { %v1257_v33 = vpop.f32.mrf.mxu2 }
 0x27b   : > { %v1258_v34 = vadd.f32 %v2403_v36, %v1257_v33 }
 0x27d   : > { %v1307_v48 = vadd.f32 %v1306_v35, %v1258_v34 }
 0x27f   : > { %1324 = vst [vmem:[%s2408_s29 + $0x78] sm:$0xff] %v1307_v48 }
 0x280   : > { %2067 = shalt.err (!%p2064_p10)
}
 0x281   : > { %s2124_s11 = smov 128   ;;  %s2125_s29 = smov 8  }
 0x282   : > { %1814 = dma.vmem_to_hbm [thread:$0]  (%p2259_p5), %s1339_s14, 2048, %s1341_s21, %s1326_s1, %s2124_s11, %s2124_s11, %s2125_s29  }
 0x283 PF: > { %s1355_s10 = sand.u32 1, %s2102_s24   ;;  %p2495_p12 = scmp.ge.s32.totalorder %s2114_s27, 2 }
 0x284   : > { %s1356_s16 = scalar_lea.sflag [#allocation4], %s1355_s10 }
 0x285   : > { %p1834_p13 = pnand %p2495_p12, %p2201_p6 }
 0x287   : > { %p1835_p0 = pneg %p1834_p13 }
 0x289   : > { %2097 = dma.done.wait (%p1835_p0), %s1356_s16, 2048  }
 0x28a   : > { %2099 = vsyncadd (%p1835_p0), %s1356_s16, 4294965248  ;;  %p22_p3 = scmp.ge.s32.totalorder %s2246_s23, 4   ;;  %s2496_s24 = smov %s2106_s25 }
 0x28b   : > { %s2497_s25 = smov %s2110_s26  ;;  %s2498_s26 = smov %s2255_s13 }
 0x28c   : > { %s2499_s27 = smov %s2246_s23  ;;  %24 = sbr.rel (!%p22_p3) target bundleno = 9 (0x9), region = 109 }
 0x291   :  { %1362 = vsyncpa [#allocation3], 1 }
 0x292   :  { %1364 = vsyncpa [#allocation3 + $0x1], 1 }
 0x293   :  { %1365 = vsyncpa [#allocation6], 1 }
 0x294   :  { %1366 = vsyncpa [#allocation9], 1 }
 0x295   :  { %1367 = vsyncpa [#allocation4], 1 }
 0x296   :  { %1369 = vsyncpa [#allocation4 + $0x1], 1 }

</bundles_post_ra>
